<compile_context>
chip_gen: v7x
topology: tpu7x:2x2x1
jax: 0.10.0
libtpu: 0.0.40
codegen_flags: <defaults>
</compile_context>

<pallas_src>
import math
import functools

import jax
import jax.numpy as jnp
from jax.experimental import pallas as pl
from jax.experimental.pallas import tpu as pltpu  # noqa: F401  (TPU backend)


# ------------------------------ fused kernel -------------------------------

def _fused_forward_kernel(src_ref, enc_w_ref, enc_b_ref, pe_ref,
                          wqkv_ref, bqkv_ref, wo_ref, bo_ref,
                          ln1g_ref, ln1b_ref, w1_ref, b1_ref, w2_ref, b2_ref,
                          ln2g_ref, ln2b_ref, dec_w_ref, dec_b_ref, out_ref,
                          *, nlayers, nhead, d_model, batch):
    D = d_model
    hd = D // nhead
    N = src_ref.shape[0]
    bf16 = jnp.bfloat16

    # ---- encoder: Linear(2205->nhid) * sqrt(input_dim) + positional encoding ----
    # sqrt(input_dim) is pre-folded into enc_w / enc_b; src is cast to bf16 in-kernel
    # (no host pad/cast dispatch).  f32 MXU accumulation.
    x = jnp.dot(src_ref[...].astype(bf16), enc_w_ref[...],
                preferred_element_type=jnp.float32)
    x = x + enc_b_ref[...] + pe_ref[...]

    # ---- block-diagonal causal additive mask, built on the VPU (no O(N^2) DMA) ----
    # rows are flattened (seq, batch): i = s*batch + b; attend iff same batch & key<=query.
    # floor-division done in f32 (exact for these magnitudes) to avoid vector int div.
    row = jax.lax.broadcasted_iota(jnp.int32, (N, N), 0).astype(jnp.float32)
    col = jax.lax.broadcasted_iota(jnp.int32, (N, N), 1).astype(jnp.float32)
    inv_b = 1.0 / batch
    s_r = jnp.floor((row + 0.5) * inv_b)
    s_c = jnp.floor((col + 0.5) * inv_b)
    b_r = row - s_r * batch
    b_c = col - s_c * batch
    mask = jnp.where((b_r == b_c) & (s_c <= s_r), 0.0, -1e30).astype(jnp.float32)

    def layer_norm(y, g, b):        # eps = 1e-5 (PyTorch default), f32 math
        mean = jnp.mean(y, axis=-1, keepdims=True)
        var = jnp.mean(jnp.square(y - mean), axis=-1, keepdims=True)
        return (y - mean) * jax.lax.rsqrt(var + 1e-5) * g + b

    for l in range(nlayers):        # static unroll — nlayers is tiny
        wqkv_l, bqkv_l = wqkv_ref[l], bqkv_ref[l]
        wo_l, bo_l = wo_ref[l], bo_ref[l]

        # ---- multi-head self attention (post-norm TransformerEncoderLayer) ----
        # fused QKV projection; 1/sqrt(hd) pre-folded into the Wq / bq columns.
        qkv = (jnp.dot(x.astype(bf16), wqkv_l,
                       preferred_element_type=jnp.float32) + bqkv_l)
        q_all = qkv[:, :D].astype(bf16)                  # (N, D)
        kT = qkv[:, D:2 * D].T.astype(bf16)              # (D, N): ONE transpose/layer
        v_all = qkv[:, 2 * D:].astype(bf16)              # (N, D)

        attn = None
        for h in range(nhead):                           # static unroll
            q = q_all[:, h * hd:(h + 1) * hd]            # (N, hd) lane slice
            kt = kT[h * hd:(h + 1) * hd, :]              # (hd, N) sublane slice
            v = v_all[:, h * hd:(h + 1) * hd]            # (N, hd)
            s = jnp.dot(q, kt, preferred_element_type=jnp.float32) + mask
            s = s - jnp.max(s, axis=-1, keepdims=True)   # keep: -1e30 mask + exp safety
            p = jnp.exp(s)
            p = p * pl.reciprocal(jnp.sum(p, axis=-1, keepdims=True), approx=True)
            head = jnp.dot(p.astype(bf16), v, preferred_element_type=jnp.float32)
            # accumulate head @ Wo[h*hd:(h+1)*hd, :] — sublane-aligned Wo slice;
            # replaces the lane-offset concat of 8-wide head outputs + single attn@Wo.
            part = jnp.dot(head.astype(bf16), wo_l[h * hd:(h + 1) * hd, :],
                           preferred_element_type=jnp.float32)
            attn = part if attn is None else attn + part
        attn = attn + bo_l
        x = layer_norm(x + attn, ln1g_ref[l], ln1b_ref[l])

        # ---- feed-forward: linear1 -> relu -> linear2 (dim_feedforward = nhid) ----
        h1 = jnp.dot(x.astype(bf16), w1_ref[l],
                     preferred_element_type=jnp.float32) + b1_ref[l]
        h1 = jnp.maximum(h1, 0.0)
        ff = jnp.dot(h1.astype(bf16), w2_ref[l],
                     preferred_element_type=jnp.float32) + b2_ref[l]
        x = layer_norm(x + ff, ln2g_ref[l], ln2b_ref[l])

    # ---- decoder: Linear(nhid, 7), padded to 128 lanes for an unmasked store ----
    out_ref[...] = (jnp.dot(x.astype(bf16), dec_w_ref[...],
                            preferred_element_type=jnp.float32) + dec_b_ref[...])


# ------------------------------- model glue --------------------------------

def positional_encoding(S, D):
    # exact reproduction of PositionalEncoding.__init__ buffer math (trace-time constant)
    pos = jnp.arange(S, dtype=jnp.float32)[:, None]
    div = jnp.exp(jnp.arange(0, D, 2, dtype=jnp.float32)
                  * (-math.log(10000.0) / (D * 0.5)))
    pe = jnp.zeros((S, D), jnp.float32)
    pe = pe.at[:, 0::2].set(jnp.sin(pos * div))
    pe = pe.at[:, 1::2].set(jnp.cos(pos * div))
    return pe  # (S, D); broadcast over batch like pe[:S, :] of shape (S, 1, D)


def transformer_forward(src, params, *, nhead, out_features=7):
    S, B, Fin = src.shape
    D = params["enc_w"].shape[1]          # d_model == nhid
    F = params["w1"].shape[2]             # dim_feedforward
    nlayers = params["wqkv"].shape[0]
    N = S * B
    hd = D // nhead
    out_pad = params["dec_w"].shape[1]    # lane-dense padded decoder width (128)

    # row-major flatten is a free bitcast; NO host-side pad / bf16 cast (fused in-kernel)
    x = src.reshape(N, Fin)

    # positional encoding replicated per (seq, batch) row (row i -> pe[i // B]);
    # depends only on static shapes -> XLA constant-folds it, zero runtime dispatch.
    pe_full = jnp.repeat(positional_encoding(S, D), B, axis=0)          # (N, D)

    # advisory cost hint for the XLA scheduler
    flops = (2 * N * Fin * D
             + nlayers * (2 * N * D * 3 * D
                          + nhead * (2 * N * hd * N + 2 * N * N * hd + 2 * N * hd * D)
                          + 4 * N * D * F)
             + 2 * N * D * out_pad)
    transcendentals = nlayers * nhead * (N * N + N) + 2 * nlayers * N
    bytes_accessed = (x.size * 4 + pe_full.size * 4 + N * out_pad * 4
                      + sum(int(v.size) * v.dtype.itemsize for v in params.values()))

    out = pl.pallas_call(
        functools.partial(_fused_forward_kernel,
                          nlayers=nlayers, nhead=nhead, d_model=D, batch=B),
        out_shape=jax.ShapeDtypeStruct((N, out_pad), jnp.float32),
        cost_estimate=pl.CostEstimate(flops=flops,
                                      transcendentals=transcendentals,
                                      bytes_accessed=bytes_accessed),
    )(x, params["enc_w"], params["enc_b"], pe_full,
      params["wqkv"], params["bqkv"], params["wo"], params["bo"],
      params["ln1_g"], params["ln1_b"], params["w1"], params["b1"],
      params["w2"], params["b2"], params["ln2_g"], params["ln2_b"],
      params["dec_w"], params["dec_b"])

    out = out[:, :out_features].reshape(S, B, out_features)
    return jnp.squeeze(out)                                             # .squeeze()


def init_params(key, *, input_dim, nhid, nlayers, nhead, in_features=2205,
                out_features=7, out_pad=128):
    D = input_dim                          # d_model (== nhid for this module)
    F = nhid                               # dim_feedforward
    hd = D // nhead
    pe_scale = math.sqrt(D)                # sqrt(input_dim), input_dim == nhid
    attn_scale = 1.0 / math.sqrt(hd)
    keys = jax.random.split(key, 4 + nlayers)

    def dense(k, shape):
        return jax.random.normal(k, shape, jnp.float32) * 0.02

    # encoder Linear(2205, nhid): sqrt(input_dim) folded in, stored bf16 (f32 acc)
    enc_w = (dense(keys[0], (in_features, nhid)) * pe_scale).astype(jnp.bfloat16)
    enc_b = dense(keys[1], (1, nhid)) * pe_scale                      # f32

    # decoder Linear(nhid, 7): N padded to 128 for a lane-dense unmasked store
    dec_w = jnp.pad(dense(keys[2], (nhid, out_features)),
                    ((0, 0), (0, out_pad - out_features))).astype(jnp.bfloat16)
    dec_b = jnp.pad(dense(keys[3], (1, out_features)),
                    ((0, 0), (0, out_pad - out_features)))            # f32

    wqkv, bqkv, wo, bo, w1, b1, w2, b2 = ([] for _ in range(8))
    for l in range(nlayers):
        lk = jax.random.split(keys[4 + l], 12)
        # fused QKV weight (D, 3D) = [Wq*scale | Wk | Wv]; attn_scale folded into Q
        wq = dense(lk[0], (D, D)) * attn_scale
        wk = dense(lk[1], (D, D))
        wv = dense(lk[2], (D, D))
        wqkv.append(jnp.concatenate([wq, wk, wv], axis=1).astype(jnp.bfloat16))
        bqkv.append(jnp.concatenate([dense(lk[3], (1, D)) * attn_scale,
                                     dense(lk[4], (1, D)),
                                     dense(lk[5], (1, D))], axis=1))   # f32
        wo.append(dense(lk[6], (D, D)).astype(jnp.bfloat16))
        bo.append(dense(lk[7], (1, D)))
        w1.append(dense(lk[8], (D, F)).astype(jnp.bfloat16))
        b1.append(dense(lk[9], (1, F)))
        w2.append(dense(lk[10], (F, D)).astype(jnp.bfloat16))
        b2.append(dense(lk[11], (1, D)))

    L = nlayers
    return {
        "enc_w": enc_w, "enc_b": enc_b,
        "dec_w": dec_w, "dec_b": dec_b,
        "wqkv": jnp.stack(wqkv), "bqkv": jnp.stack(bqkv),
        "wo": jnp.stack(wo), "bo": jnp.stack(bo),
        "ln1_g": jnp.ones((L, 1, D), jnp.float32),
        "ln1_b": jnp.zeros((L, 1, D), jnp.float32),
        "w1": jnp.stack(w1), "b1": jnp.stack(b1),
        "w2": jnp.stack(w2), "b2": jnp.stack(b2),
        "ln2_g": jnp.ones((L, 1, D), jnp.float32),
        "ln2_b": jnp.zeros((L, 1, D), jnp.float32),
    }


if __name__ == "__main__":
    S, B = 8, 2                   # seq-first: src is (S, B, 2205)
    input_dim = nhid = 32         # forward requires input_dim == nhid
    nhead, nlayers = 4, 2

    key = jax.random.PRNGKey(0)
    pkey, xkey = jax.random.split(key)
    params = init_params(pkey, input_dim=input_dim, nhid=nhid,
                         nlayers=nlayers, nhead=nhead)
    src = jax.random.normal(xkey, (S, B, 2205), jnp.float32)

    fwd = jax.jit(functools.partial(transformer_forward, nhead=nhead))
    out = fwd(src, params)
    jax.block_until_ready(out)
    assert out.shape == (S, B, 7)
    print("KERNEL_OK")
</pallas_src>

<mosaic_0001>
module attributes {stable_mosaic.version = 11 : i64} {
  func.func @_fused_forward_kernel(%arg0: memref<16x2205xf32, #tpu.memory_space<vmem>>, %arg1: memref<2205x32xbf16, #tpu.memory_space<vmem>>, %arg2: memref<1x32xf32, #tpu.memory_space<vmem>>, %arg3: memref<16x32xf32, #tpu.memory_space<vmem>>, %arg4: memref<2x32x96xbf16, #tpu.memory_space<vmem>>, %arg5: memref<2x1x96xf32, #tpu.memory_space<vmem>>, %arg6: memref<2x32x32xbf16, #tpu.memory_space<vmem>>, %arg7: memref<2x1x32xf32, #tpu.memory_space<vmem>>, %arg8: memref<2x1x32xf32, #tpu.memory_space<vmem>>, %arg9: memref<2x1x32xf32, #tpu.memory_space<vmem>>, %arg10: memref<2x32x32xbf16, #tpu.memory_space<vmem>>, %arg11: memref<2x1x32xf32, #tpu.memory_space<vmem>>, %arg12: memref<2x32x32xbf16, #tpu.memory_space<vmem>>, %arg13: memref<2x1x32xf32, #tpu.memory_space<vmem>>, %arg14: memref<2x1x32xf32, #tpu.memory_space<vmem>>, %arg15: memref<2x1x32xf32, #tpu.memory_space<vmem>>, %arg16: memref<32x128xbf16, #tpu.memory_space<vmem>>, %arg17: memref<1x128xf32, #tpu.memory_space<vmem>>, %arg18: memref<16x128xf32, #tpu.memory_space<vmem>>) attributes {dimension_semantics = [], scalar_prefetch = 0 : i64, scratch_operands = 0 : i64, tpu.core_type = #tpu.core_type<tc>} {
    %c0 = arith.constant 0 : index
    %c0_0 = arith.constant 0 : index
    %0 = vector.load %arg0[%c0, %c0_0] : memref<16x2205xf32, #tpu.memory_space<vmem>>, vector<16x2205xf32>
    %1 = arith.truncf %0 : vector<16x2205xf32> to vector<16x2205xbf16>
    %c0_1 = arith.constant 0 : index
    %c0_2 = arith.constant 0 : index
    %2 = vector.load %arg1[%c0_1, %c0_2] : memref<2205x32xbf16, #tpu.memory_space<vmem>>, vector<2205x32xbf16>
    %cst = arith.constant dense<0.000000e+00> : vector<16x32xf32>
    %3 = tpu.matmul %1, %2, %cst {dimension_numbers = #tpu.dot_dimension_numbers<[1], [0], [0], [1], [0, 0, 1, 1], [], []>} : vector<16x2205xbf16>, vector<2205x32xbf16>, vector<16x32xf32> -> vector<16x32xf32>
    %c0_3 = arith.constant 0 : index
    %c0_4 = arith.constant 0 : index
    %4 = vector.load %arg2[%c0_3, %c0_4] : memref<1x32xf32, #tpu.memory_space<vmem>>, vector<1x32xf32>
    %5 = vector.broadcast %4 : vector<1x32xf32> to vector<16x32xf32>
    %6 = arith.addf %3, %5 : vector<16x32xf32>
    %c0_5 = arith.constant 0 : index
    %c0_6 = arith.constant 0 : index
    %7 = vector.load %arg3[%c0_5, %c0_6] : memref<16x32xf32, #tpu.memory_space<vmem>>, vector<16x32xf32>
    %8 = arith.addf %6, %7 : vector<16x32xf32>
    %9 = tpu.iota {dimensions = array<i32: 0>} : vector<16x16xi32>
    %10 = arith.sitofp %9 : vector<16x16xi32> to vector<16x16xf32>
    %11 = tpu.iota {dimensions = array<i32: 1>} : vector<16x16xi32>
    %12 = arith.sitofp %11 : vector<16x16xi32> to vector<16x16xf32>
    %cst_7 = arith.constant 5.000000e-01 : f32
    %13 = vector.broadcast %cst_7 : f32 to vector<16x16xf32>
    %14 = arith.addf %10, %13 : vector<16x16xf32>
    %cst_8 = arith.constant 5.000000e-01 : f32
    %15 = vector.broadcast %cst_8 : f32 to vector<16x16xf32>
    %16 = arith.mulf %14, %15 : vector<16x16xf32>
    %17 = math.floor %16 : vector<16x16xf32>
    %cst_9 = arith.constant 5.000000e-01 : f32
    %18 = vector.broadcast %cst_9 : f32 to vector<16x16xf32>
    %19 = arith.addf %12, %18 : vector<16x16xf32>
    %cst_10 = arith.constant 5.000000e-01 : f32
    %20 = vector.broadcast %cst_10 : f32 to vector<16x16xf32>
    %21 = arith.mulf %19, %20 : vector<16x16xf32>
    %22 = math.floor %21 : vector<16x16xf32>
    %cst_11 = arith.constant 2.000000e+00 : f32
    %23 = vector.broadcast %cst_11 : f32 to vector<16x16xf32>
    %24 = arith.mulf %17, %23 : vector<16x16xf32>
    %25 = arith.subf %10, %24 : vector<16x16xf32>
    %cst_12 = arith.constant 2.000000e+00 : f32
    %26 = vector.broadcast %cst_12 : f32 to vector<16x16xf32>
    %27 = arith.mulf %22, %26 : vector<16x16xf32>
    %28 = arith.subf %12, %27 : vector<16x16xf32>
    %29 = arith.cmpf oeq, %25, %28 : vector<16x16xf32>
    %30 = arith.cmpf ole, %22, %17 : vector<16x16xf32>
    %31 = arith.andi %29, %30 : vector<16x16xi1>
    %cst_13 = arith.constant 0.000000e+00 : f32
    %cst_14 = arith.constant -1.000000e+30 : f32
    %32 = vector.broadcast %cst_13 : f32 to vector<16x16xf32>
    %33 = vector.broadcast %cst_14 : f32 to vector<16x16xf32>
    %34 = arith.select %31, %32, %33 : vector<16x16xi1>, vector<16x16xf32>
    %c0_15 = arith.constant 0 : index
    %c0_16 = arith.constant 0 : index
    %c0_17 = arith.constant 0 : index
    %35 = vector.load %arg4[%c0_15, %c0_16, %c0_17] : memref<2x32x96xbf16, #tpu.memory_space<vmem>>, vector<1x32x96xbf16>
    %36 = vector.shape_cast %35 : vector<1x32x96xbf16> to vector<32x96xbf16>
    %c0_18 = arith.constant 0 : index
    %c0_19 = arith.constant 0 : index
    %c0_20 = arith.constant 0 : index
    %37 = vector.load %arg5[%c0_18, %c0_19, %c0_20] : memref<2x1x96xf32, #tpu.memory_space<vmem>>, vector<1x1x96xf32>
    %38 = vector.shape_cast %37 : vector<1x1x96xf32> to vector<1x96xf32>
    %c0_21 = arith.constant 0 : index
    %c0_22 = arith.constant 0 : index
    %c0_23 = arith.constant 0 : index
    %39 = vector.load %arg6[%c0_21, %c0_22, %c0_23] : memref<2x32x32xbf16, #tpu.memory_space<vmem>>, vector<1x32x32xbf16>
    %40 = vector.shape_cast %39 : vector<1x32x32xbf16> to vector<32x32xbf16>
    %c0_24 = arith.constant 0 : index
    %c0_25 = arith.constant 0 : index
    %c0_26 = arith.constant 0 : index
    %41 = vector.load %arg7[%c0_24, %c0_25, %c0_26] : memref<2x1x32xf32, #tpu.memory_space<vmem>>, vector<1x1x32xf32>
    %42 = vector.shape_cast %41 : vector<1x1x32xf32> to vector<1x32xf32>
    %43 = arith.truncf %8 : vector<16x32xf32> to vector<16x32xbf16>
    %cst_27 = arith.constant dense<0.000000e+00> : vector<16x96xf32>
    %44 = tpu.matmul %43, %36, %cst_27 {dimension_numbers = #tpu.dot_dimension_numbers<[1], [0], [0], [1], [0, 0, 1, 1], [], []>} : vector<16x32xbf16>, vector<32x96xbf16>, vector<16x96xf32> -> vector<16x96xf32>
    %45 = vector.broadcast %38 : vector<1x96xf32> to vector<16x96xf32>
    %46 = arith.addf %44, %45 : vector<16x96xf32>
    %47 = vector.extract_strided_slice %46 {offsets = [0, 0], sizes = [16, 32], strides = [1, 1]} : vector<16x96xf32> to vector<16x32xf32>
    %48 = arith.truncf %47 : vector<16x32xf32> to vector<16x32xbf16>
    %49 = vector.extract_strided_slice %46 {offsets = [0, 32], sizes = [16, 32], strides = [1, 1]} : vector<16x96xf32> to vector<16x32xf32>
    %50 = tpu.transpose %49, [1, 0] : vector<16x32xf32> -> vector<32x16xf32>
    %51 = arith.truncf %50 : vector<32x16xf32> to vector<32x16xbf16>
    %52 = vector.extract_strided_slice %46 {offsets = [0, 64], sizes = [16, 32], strides = [1, 1]} : vector<16x96xf32> to vector<16x32xf32>
    %53 = arith.truncf %52 : vector<16x32xf32> to vector<16x32xbf16>
    %54 = vector.extract_strided_slice %48 {offsets = [0, 0], sizes = [16, 8], strides = [1, 1]} : vector<16x32xbf16> to vector<16x8xbf16>
    %55 = vector.extract_strided_slice %51 {offsets = [0, 0], sizes = [8, 16], strides = [1, 1]} : vector<32x16xbf16> to vector<8x16xbf16>
    %56 = vector.extract_strided_slice %53 {offsets = [0, 0], sizes = [16, 8], strides = [1, 1]} : vector<16x32xbf16> to vector<16x8xbf16>
    %cst_28 = arith.constant dense<0.000000e+00> : vector<16x16xf32>
    %57 = tpu.matmul %54, %55, %cst_28 {dimension_numbers = #tpu.dot_dimension_numbers<[1], [0], [0], [1], [0, 0, 1, 1], [], []>} : vector<16x8xbf16>, vector<8x16xbf16>, vector<16x16xf32> -> vector<16x16xf32>
    %58 = arith.addf %57, %34 : vector<16x16xf32>
    %cst_29 = arith.constant dense<0xFF800000> : vector<16xf32>
    %59 = vector.multi_reduction <maximumf>, %58, %cst_29 [1] : vector<16x16xf32> to vector<16xf32>
    %60 = vector.shape_cast %59 : vector<16xf32> to vector<16x1xf32>
    %61 = vector.broadcast %60 : vector<16x1xf32> to vector<16x16xf32>
    %62 = arith.subf %58, %61 : vector<16x16xf32>
    %63 = math.exp %62 : vector<16x16xf32>
    %cst_30 = arith.constant dense<0.000000e+00> : vector<16xf32>
    %64 = vector.multi_reduction <add>, %63, %cst_30 [1] : vector<16x16xf32> to vector<16xf32>
    %65 = vector.shape_cast %64 : vector<16xf32> to vector<16x1xf32>
    %66 = tpu.reciprocal %65 {approx = true} : vector<16x1xf32> -> vector<16x1xf32>
    %67 = vector.broadcast %66 : vector<16x1xf32> to vector<16x16xf32>
    %68 = arith.mulf %63, %67 : vector<16x16xf32>
    %69 = arith.truncf %68 : vector<16x16xf32> to vector<16x16xbf16>
    %cst_31 = arith.constant dense<0.000000e+00> : vector<16x8xf32>
    %70 = tpu.matmul %69, %56, %cst_31 {dimension_numbers = #tpu.dot_dimension_numbers<[1], [0], [0], [1], [0, 0, 1, 1], [], []>} : vector<16x16xbf16>, vector<16x8xbf16>, vector<16x8xf32> -> vector<16x8xf32>
    %71 = arith.truncf %70 : vector<16x8xf32> to vector<16x8xbf16>
    %72 = vector.extract_strided_slice %40 {offsets = [0, 0], sizes = [8, 32], strides = [1, 1]} : vector<32x32xbf16> to vector<8x32xbf16>
    %cst_32 = arith.constant dense<0.000000e+00> : vector<16x32xf32>
    %73 = tpu.matmul %71, %72, %cst_32 {dimension_numbers = #tpu.dot_dimension_numbers<[1], [0], [0], [1], [0, 0, 1, 1], [], []>} : vector<16x8xbf16>, vector<8x32xbf16>, vector<16x32xf32> -> vector<16x32xf32>
    %74 = vector.extract_strided_slice %48 {offsets = [0, 8], sizes = [16, 8], strides = [1, 1]} : vector<16x32xbf16> to vector<16x8xbf16>
    %75 = vector.extract_strided_slice %51 {offsets = [8, 0], sizes = [8, 16], strides = [1, 1]} : vector<32x16xbf16> to vector<8x16xbf16>
    %76 = vector.extract_strided_slice %53 {offsets = [0, 8], sizes = [16, 8], strides = [1, 1]} : vector<16x32xbf16> to vector<16x8xbf16>
    %cst_33 = arith.constant dense<0.000000e+00> : vector<16x16xf32>
    %77 = tpu.matmul %74, %75, %cst_33 {dimension_numbers = #tpu.dot_dimension_numbers<[1], [0], [0], [1], [0, 0, 1, 1], [], []>} : vector<16x8xbf16>, vector<8x16xbf16>, vector<16x16xf32> -> vector<16x16xf32>
    %78 = arith.addf %77, %34 : vector<16x16xf32>
    %cst_34 = arith.constant dense<0xFF800000> : vector<16xf32>
    %79 = vector.multi_reduction <maximumf>, %78, %cst_34 [1] : vector<16x16xf32> to vector<16xf32>
    %80 = vector.shape_cast %79 : vector<16xf32> to vector<16x1xf32>
    %81 = vector.broadcast %80 : vector<16x1xf32> to vector<16x16xf32>
    %82 = arith.subf %78, %81 : vector<16x16xf32>
    %83 = math.exp %82 : vector<16x16xf32>
    %cst_35 = arith.constant dense<0.000000e+00> : vector<16xf32>
    %84 = vector.multi_reduction <add>, %83, %cst_35 [1] : vector<16x16xf32> to vector<16xf32>
    %85 = vector.shape_cast %84 : vector<16xf32> to vector<16x1xf32>
    %86 = tpu.reciprocal %85 {approx = true} : vector<16x1xf32> -> vector<16x1xf32>
    %87 = vector.broadcast %86 : vector<16x1xf32> to vector<16x16xf32>
    %88 = arith.mulf %83, %87 : vector<16x16xf32>
    %89 = arith.truncf %88 : vector<16x16xf32> to vector<16x16xbf16>
    %cst_36 = arith.constant dense<0.000000e+00> : vector<16x8xf32>
    %90 = tpu.matmul %89, %76, %cst_36 {dimension_numbers = #tpu.dot_dimension_numbers<[1], [0], [0], [1], [0, 0, 1, 1], [], []>} : vector<16x16xbf16>, vector<16x8xbf16>, vector<16x8xf32> -> vector<16x8xf32>
    %91 = arith.truncf %90 : vector<16x8xf32> to vector<16x8xbf16>
    %92 = vector.extract_strided_slice %40 {offsets = [8, 0], sizes = [8, 32], strides = [1, 1]} : vector<32x32xbf16> to vector<8x32xbf16>
    %cst_37 = arith.constant dense<0.000000e+00> : vector<16x32xf32>
    %93 = tpu.matmul %91, %92, %cst_37 {dimension_numbers = #tpu.dot_dimension_numbers<[1], [0], [0], [1], [0, 0, 1, 1], [], []>} : vector<16x8xbf16>, vector<8x32xbf16>, vector<16x32xf32> -> vector<16x32xf32>
    %94 = arith.addf %73, %93 : vector<16x32xf32>
    %95 = vector.extract_strided_slice %48 {offsets = [0, 16], sizes = [16, 8], strides = [1, 1]} : vector<16x32xbf16> to vector<16x8xbf16>
    %96 = vector.extract_strided_slice %51 {offsets = [16, 0], sizes = [8, 16], strides = [1, 1]} : vector<32x16xbf16> to vector<8x16xbf16>
    %97 = vector.extract_strided_slice %53 {offsets = [0, 16], sizes = [16, 8], strides = [1, 1]} : vector<16x32xbf16> to vector<16x8xbf16>
    %cst_38 = arith.constant dense<0.000000e+00> : vector<16x16xf32>
    %98 = tpu.matmul %95, %96, %cst_38 {dimension_numbers = #tpu.dot_dimension_numbers<[1], [0], [0], [1], [0, 0, 1, 1], [], []>} : vector<16x8xbf16>, vector<8x16xbf16>, vector<16x16xf32> -> vector<16x16xf32>
    %99 = arith.addf %98, %34 : vector<16x16xf32>
    %cst_39 = arith.constant dense<0xFF800000> : vector<16xf32>
    %100 = vector.multi_reduction <maximumf>, %99, %cst_39 [1] : vector<16x16xf32> to vector<16xf32>
    %101 = vector.shape_cast %100 : vector<16xf32> to vector<16x1xf32>
    %102 = vector.broadcast %101 : vector<16x1xf32> to vector<16x16xf32>
    %103 = arith.subf %99, %102 : vector<16x16xf32>
    %104 = math.exp %103 : vector<16x16xf32>
    %cst_40 = arith.constant dense<0.000000e+00> : vector<16xf32>
    %105 = vector.multi_reduction <add>, %104, %cst_40 [1] : vector<16x16xf32> to vector<16xf32>
    %106 = vector.shape_cast %105 : vector<16xf32> to vector<16x1xf32>
    %107 = tpu.reciprocal %106 {approx = true} : vector<16x1xf32> -> vector<16x1xf32>
    %108 = vector.broadcast %107 : vector<16x1xf32> to vector<16x16xf32>
    %109 = arith.mulf %104, %108 : vector<16x16xf32>
    %110 = arith.truncf %109 : vector<16x16xf32> to vector<16x16xbf16>
    %cst_41 = arith.constant dense<0.000000e+00> : vector<16x8xf32>
    %111 = tpu.matmul %110, %97, %cst_41 {dimension_numbers = #tpu.dot_dimension_numbers<[1], [0], [0], [1], [0, 0, 1, 1], [], []>} : vector<16x16xbf16>, vector<16x8xbf16>, vector<16x8xf32> -> vector<16x8xf32>
    %112 = arith.truncf %111 : vector<16x8xf32> to vector<16x8xbf16>
    %113 = vector.extract_strided_slice %40 {offsets = [16, 0], sizes = [8, 32], strides = [1, 1]} : vector<32x32xbf16> to vector<8x32xbf16>
    %cst_42 = arith.constant dense<0.000000e+00> : vector<16x32xf32>
    %114 = tpu.matmul %112, %113, %cst_42 {dimension_numbers = #tpu.dot_dimension_numbers<[1], [0], [0], [1], [0, 0, 1, 1], [], []>} : vector<16x8xbf16>, vector<8x32xbf16>, vector<16x32xf32> -> vector<16x32xf32>
    %115 = arith.addf %94, %114 : vector<16x32xf32>
    %116 = vector.extract_strided_slice %48 {offsets = [0, 24], sizes = [16, 8], strides = [1, 1]} : vector<16x32xbf16> to vector<16x8xbf16>
    %117 = vector.extract_strided_slice %51 {offsets = [24, 0], sizes = [8, 16], strides = [1, 1]} : vector<32x16xbf16> to vector<8x16xbf16>
    %118 = vector.extract_strided_slice %53 {offsets = [0, 24], sizes = [16, 8], strides = [1, 1]} : vector<16x32xbf16> to vector<16x8xbf16>
    %cst_43 = arith.constant dense<0.000000e+00> : vector<16x16xf32>
    %119 = tpu.matmul %116, %117, %cst_43 {dimension_numbers = #tpu.dot_dimension_numbers<[1], [0], [0], [1], [0, 0, 1, 1], [], []>} : vector<16x8xbf16>, vector<8x16xbf16>, vector<16x16xf32> -> vector<16x16xf32>
    %120 = arith.addf %119, %34 : vector<16x16xf32>
    %cst_44 = arith.constant dense<0xFF800000> : vector<16xf32>
    %121 = vector.multi_reduction <maximumf>, %120, %cst_44 [1] : vector<16x16xf32> to vector<16xf32>
    %122 = vector.shape_cast %121 : vector<16xf32> to vector<16x1xf32>
    %123 = vector.broadcast %122 : vector<16x1xf32> to vector<16x16xf32>
    %124 = arith.subf %120, %123 : vector<16x16xf32>
    %125 = math.exp %124 : vector<16x16xf32>
    %cst_45 = arith.constant dense<0.000000e+00> : vector<16xf32>
    %126 = vector.multi_reduction <add>, %125, %cst_45 [1] : vector<16x16xf32> to vector<16xf32>
    %127 = vector.shape_cast %126 : vector<16xf32> to vector<16x1xf32>
    %128 = tpu.reciprocal %127 {approx = true} : vector<16x1xf32> -> vector<16x1xf32>
    %129 = vector.broadcast %128 : vector<16x1xf32> to vector<16x16xf32>
    %130 = arith.mulf %125, %129 : vector<16x16xf32>
    %131 = arith.truncf %130 : vector<16x16xf32> to vector<16x16xbf16>
    %cst_46 = arith.constant dense<0.000000e+00> : vector<16x8xf32>
    %132 = tpu.matmul %131, %118, %cst_46 {dimension_numbers = #tpu.dot_dimension_numbers<[1], [0], [0], [1], [0, 0, 1, 1], [], []>} : vector<16x16xbf16>, vector<16x8xbf16>, vector<16x8xf32> -> vector<16x8xf32>
    %133 = arith.truncf %132 : vector<16x8xf32> to vector<16x8xbf16>
    %134 = vector.extract_strided_slice %40 {offsets = [24, 0], sizes = [8, 32], strides = [1, 1]} : vector<32x32xbf16> to vector<8x32xbf16>
    %cst_47 = arith.constant dense<0.000000e+00> : vector<16x32xf32>
    %135 = tpu.matmul %133, %134, %cst_47 {dimension_numbers = #tpu.dot_dimension_numbers<[1], [0], [0], [1], [0, 0, 1, 1], [], []>} : vector<16x8xbf16>, vector<8x32xbf16>, vector<16x32xf32> -> vector<16x32xf32>
    %136 = arith.addf %115, %135 : vector<16x32xf32>
    %137 = vector.broadcast %42 : vector<1x32xf32> to vector<16x32xf32>
    %138 = arith.addf %136, %137 : vector<16x32xf32>
    %139 = arith.addf %8, %138 : vector<16x32xf32>
    %c0_48 = arith.constant 0 : index
    %c0_49 = arith.constant 0 : index
    %c0_50 = arith.constant 0 : index
    %140 = vector.load %arg8[%c0_48, %c0_49, %c0_50] : memref<2x1x32xf32, #tpu.memory_space<vmem>>, vector<1x1x32xf32>
    %141 = vector.shape_cast %140 : vector<1x1x32xf32> to vector<1x32xf32>
    %c0_51 = arith.constant 0 : index
    %c0_52 = arith.constant 0 : index
    %c0_53 = arith.constant 0 : index
    %142 = vector.load %arg9[%c0_51, %c0_52, %c0_53] : memref<2x1x32xf32, #tpu.memory_space<vmem>>, vector<1x1x32xf32>
    %143 = vector.shape_cast %142 : vector<1x1x32xf32> to vector<1x32xf32>
    %cst_54 = arith.constant dense<0.000000e+00> : vector<16xf32>
    %144 = vector.multi_reduction <add>, %139, %cst_54 [1] : vector<16x32xf32> to vector<16xf32>
    %145 = vector.shape_cast %144 : vector<16xf32> to vector<16x1xf32>
    %cst_55 = arith.constant 3.200000e+01 : f32
    %146 = vector.broadcast %cst_55 : f32 to vector<16x1xf32>
    %147 = arith.divf %145, %146 : vector<16x1xf32>
    %148 = vector.broadcast %147 : vector<16x1xf32> to vector<16x32xf32>
    %149 = arith.subf %139, %148 : vector<16x32xf32>
    %150 = arith.mulf %149, %149 : vector<16x32xf32>
    %cst_56 = arith.constant dense<0.000000e+00> : vector<16xf32>
    %151 = vector.multi_reduction <add>, %150, %cst_56 [1] : vector<16x32xf32> to vector<16xf32>
    %152 = vector.shape_cast %151 : vector<16xf32> to vector<16x1xf32>
    %cst_57 = arith.constant 3.200000e+01 : f32
    %153 = vector.broadcast %cst_57 : f32 to vector<16x1xf32>
    %154 = arith.divf %152, %153 : vector<16x1xf32>
    %155 = vector.broadcast %147 : vector<16x1xf32> to vector<16x32xf32>
    %156 = arith.subf %139, %155 : vector<16x32xf32>
    %cst_58 = arith.constant 9.99999974E-6 : f32
    %157 = vector.broadcast %cst_58 : f32 to vector<16x1xf32>
    %158 = arith.addf %154, %157 : vector<16x1xf32>
    %159 = math.rsqrt %158 : vector<16x1xf32>
    %160 = vector.broadcast %159 : vector<16x1xf32> to vector<16x32xf32>
    %161 = arith.mulf %156, %160 : vector<16x32xf32>
    %162 = vector.broadcast %141 : vector<1x32xf32> to vector<16x32xf32>
    %163 = arith.mulf %161, %162 : vector<16x32xf32>
    %164 = vector.broadcast %143 : vector<1x32xf32> to vector<16x32xf32>
    %165 = arith.addf %163, %164 : vector<16x32xf32>
    %166 = arith.truncf %165 : vector<16x32xf32> to vector<16x32xbf16>
    %c0_59 = arith.constant 0 : index
    %c0_60 = arith.constant 0 : index
    %c0_61 = arith.constant 0 : index
    %167 = vector.load %arg10[%c0_59, %c0_60, %c0_61] : memref<2x32x32xbf16, #tpu.memory_space<vmem>>, vector<1x32x32xbf16>
    %168 = vector.shape_cast %167 : vector<1x32x32xbf16> to vector<32x32xbf16>
    %cst_62 = arith.constant dense<0.000000e+00> : vector<16x32xf32>
    %169 = tpu.matmul %166, %168, %cst_62 {dimension_numbers = #tpu.dot_dimension_numbers<[1], [0], [0], [1], [0, 0, 1, 1], [], []>} : vector<16x32xbf16>, vector<32x32xbf16>, vector<16x32xf32> -> vector<16x32xf32>
    %c0_63 = arith.constant 0 : index
    %c0_64 = arith.constant 0 : index
    %c0_65 = arith.constant 0 : index
    %170 = vector.load %arg11[%c0_63, %c0_64, %c0_65] : memref<2x1x32xf32, #tpu.memory_space<vmem>>, vector<1x1x32xf32>
    %171 = vector.shape_cast %170 : vector<1x1x32xf32> to vector<1x32xf32>
    %172 = vector.broadcast %171 : vector<1x32xf32> to vector<16x32xf32>
    %173 = arith.addf %169, %172 : vector<16x32xf32>
    %cst_66 = arith.constant 0.000000e+00 : f32
    %174 = vector.broadcast %cst_66 : f32 to vector<16x32xf32>
    %175 = arith.maximumf %173, %174 : vector<16x32xf32>
    %176 = arith.truncf %175 : vector<16x32xf32> to vector<16x32xbf16>
    %c0_67 = arith.constant 0 : index
    %c0_68 = arith.constant 0 : index
    %c0_69 = arith.constant 0 : index
    %177 = vector.load %arg12[%c0_67, %c0_68, %c0_69] : memref<2x32x32xbf16, #tpu.memory_space<vmem>>, vector<1x32x32xbf16>
    %178 = vector.shape_cast %177 : vector<1x32x32xbf16> to vector<32x32xbf16>
    %cst_70 = arith.constant dense<0.000000e+00> : vector<16x32xf32>
    %179 = tpu.matmul %176, %178, %cst_70 {dimension_numbers = #tpu.dot_dimension_numbers<[1], [0], [0], [1], [0, 0, 1, 1], [], []>} : vector<16x32xbf16>, vector<32x32xbf16>, vector<16x32xf32> -> vector<16x32xf32>
    %c0_71 = arith.constant 0 : index
    %c0_72 = arith.constant 0 : index
    %c0_73 = arith.constant 0 : index
    %180 = vector.load %arg13[%c0_71, %c0_72, %c0_73] : memref<2x1x32xf32, #tpu.memory_space<vmem>>, vector<1x1x32xf32>
    %181 = vector.shape_cast %180 : vector<1x1x32xf32> to vector<1x32xf32>
    %182 = vector.broadcast %181 : vector<1x32xf32> to vector<16x32xf32>
    %183 = arith.addf %179, %182 : vector<16x32xf32>
    %184 = arith.addf %165, %183 : vector<16x32xf32>
    %c0_74 = arith.constant 0 : index
    %c0_75 = arith.constant 0 : index
    %c0_76 = arith.constant 0 : index
    %185 = vector.load %arg14[%c0_74, %c0_75, %c0_76] : memref<2x1x32xf32, #tpu.memory_space<vmem>>, vector<1x1x32xf32>
    %186 = vector.shape_cast %185 : vector<1x1x32xf32> to vector<1x32xf32>
    %c0_77 = arith.constant 0 : index
    %c0_78 = arith.constant 0 : index
    %c0_79 = arith.constant 0 : index
    %187 = vector.load %arg15[%c0_77, %c0_78, %c0_79] : memref<2x1x32xf32, #tpu.memory_space<vmem>>, vector<1x1x32xf32>
    %188 = vector.shape_cast %187 : vector<1x1x32xf32> to vector<1x32xf32>
    %cst_80 = arith.constant dense<0.000000e+00> : vector<16xf32>
    %189 = vector.multi_reduction <add>, %184, %cst_80 [1] : vector<16x32xf32> to vector<16xf32>
    %190 = vector.shape_cast %189 : vector<16xf32> to vector<16x1xf32>
    %cst_81 = arith.constant 3.200000e+01 : f32
    %191 = vector.broadcast %cst_81 : f32 to vector<16x1xf32>
    %192 = arith.divf %190, %191 : vector<16x1xf32>
    %193 = vector.broadcast %192 : vector<16x1xf32> to vector<16x32xf32>
    %194 = arith.subf %184, %193 : vector<16x32xf32>
    %195 = arith.mulf %194, %194 : vector<16x32xf32>
    %cst_82 = arith.constant dense<0.000000e+00> : vector<16xf32>
    %196 = vector.multi_reduction <add>, %195, %cst_82 [1] : vector<16x32xf32> to vector<16xf32>
    %197 = vector.shape_cast %196 : vector<16xf32> to vector<16x1xf32>
    %cst_83 = arith.constant 3.200000e+01 : f32
    %198 = vector.broadcast %cst_83 : f32 to vector<16x1xf32>
    %199 = arith.divf %197, %198 : vector<16x1xf32>
    %200 = vector.broadcast %192 : vector<16x1xf32> to vector<16x32xf32>
    %201 = arith.subf %184, %200 : vector<16x32xf32>
    %cst_84 = arith.constant 9.99999974E-6 : f32
    %202 = vector.broadcast %cst_84 : f32 to vector<16x1xf32>
    %203 = arith.addf %199, %202 : vector<16x1xf32>
    %204 = math.rsqrt %203 : vector<16x1xf32>
    %205 = vector.broadcast %204 : vector<16x1xf32> to vector<16x32xf32>
    %206 = arith.mulf %201, %205 : vector<16x32xf32>
    %207 = vector.broadcast %186 : vector<1x32xf32> to vector<16x32xf32>
    %208 = arith.mulf %206, %207 : vector<16x32xf32>
    %209 = vector.broadcast %188 : vector<1x32xf32> to vector<16x32xf32>
    %210 = arith.addf %208, %209 : vector<16x32xf32>
    %c1 = arith.constant 1 : index
    %c0_85 = arith.constant 0 : index
    %c0_86 = arith.constant 0 : index
    %211 = vector.load %arg4[%c1, %c0_85, %c0_86] : memref<2x32x96xbf16, #tpu.memory_space<vmem>>, vector<1x32x96xbf16>
    %212 = vector.shape_cast %211 : vector<1x32x96xbf16> to vector<32x96xbf16>
    %c1_87 = arith.constant 1 : index
    %c0_88 = arith.constant 0 : index
    %c0_89 = arith.constant 0 : index
    %213 = vector.load %arg5[%c1_87, %c0_88, %c0_89] : memref<2x1x96xf32, #tpu.memory_space<vmem>>, vector<1x1x96xf32>
    %214 = vector.shape_cast %213 : vector<1x1x96xf32> to vector<1x96xf32>
    %c1_90 = arith.constant 1 : index
    %c0_91 = arith.constant 0 : index
    %c0_92 = arith.constant 0 : index
    %215 = vector.load %arg6[%c1_90, %c0_91, %c0_92] : memref<2x32x32xbf16, #tpu.memory_space<vmem>>, vector<1x32x32xbf16>
    %216 = vector.shape_cast %215 : vector<1x32x32xbf16> to vector<32x32xbf16>
    %c1_93 = arith.constant 1 : index
    %c0_94 = arith.constant 0 : index
    %c0_95 = arith.constant 0 : index
    %217 = vector.load %arg7[%c1_93, %c0_94, %c0_95] : memref<2x1x32xf32, #tpu.memory_space<vmem>>, vector<1x1x32xf32>
    %218 = vector.shape_cast %217 : vector<1x1x32xf32> to vector<1x32xf32>
    %219 = arith.truncf %210 : vector<16x32xf32> to vector<16x32xbf16>
    %cst_96 = arith.constant dense<0.000000e+00> : vector<16x96xf32>
    %220 = tpu.matmul %219, %212, %cst_96 {dimension_numbers = #tpu.dot_dimension_numbers<[1], [0], [0], [1], [0, 0, 1, 1], [], []>} : vector<16x32xbf16>, vector<32x96xbf16>, vector<16x96xf32> -> vector<16x96xf32>
    %221 = vector.broadcast %214 : vector<1x96xf32> to vector<16x96xf32>
    %222 = arith.addf %220, %221 : vector<16x96xf32>
    %223 = vector.extract_strided_slice %222 {offsets = [0, 0], sizes = [16, 32], strides = [1, 1]} : vector<16x96xf32> to vector<16x32xf32>
    %224 = arith.truncf %223 : vector<16x32xf32> to vector<16x32xbf16>
    %225 = vector.extract_strided_slice %222 {offsets = [0, 32], sizes = [16, 32], strides = [1, 1]} : vector<16x96xf32> to vector<16x32xf32>
    %226 = tpu.transpose %225, [1, 0] : vector<16x32xf32> -> vector<32x16xf32>
    %227 = arith.truncf %226 : vector<32x16xf32> to vector<32x16xbf16>
    %228 = vector.extract_strided_slice %222 {offsets = [0, 64], sizes = [16, 32], strides = [1, 1]} : vector<16x96xf32> to vector<16x32xf32>
    %229 = arith.truncf %228 : vector<16x32xf32> to vector<16x32xbf16>
    %230 = vector.extract_strided_slice %224 {offsets = [0, 0], sizes = [16, 8], strides = [1, 1]} : vector<16x32xbf16> to vector<16x8xbf16>
    %231 = vector.extract_strided_slice %227 {offsets = [0, 0], sizes = [8, 16], strides = [1, 1]} : vector<32x16xbf16> to vector<8x16xbf16>
    %232 = vector.extract_strided_slice %229 {offsets = [0, 0], sizes = [16, 8], strides = [1, 1]} : vector<16x32xbf16> to vector<16x8xbf16>
    %cst_97 = arith.constant dense<0.000000e+00> : vector<16x16xf32>
    %233 = tpu.matmul %230, %231, %cst_97 {dimension_numbers = #tpu.dot_dimension_numbers<[1], [0], [0], [1], [0, 0, 1, 1], [], []>} : vector<16x8xbf16>, vector<8x16xbf16>, vector<16x16xf32> -> vector<16x16xf32>
    %234 = arith.addf %233, %34 : vector<16x16xf32>
    %cst_98 = arith.constant dense<0xFF800000> : vector<16xf32>
    %235 = vector.multi_reduction <maximumf>, %234, %cst_98 [1] : vector<16x16xf32> to vector<16xf32>
    %236 = vector.shape_cast %235 : vector<16xf32> to vector<16x1xf32>
    %237 = vector.broadcast %236 : vector<16x1xf32> to vector<16x16xf32>
    %238 = arith.subf %234, %237 : vector<16x16xf32>
    %239 = math.exp %238 : vector<16x16xf32>
    %cst_99 = arith.constant dense<0.000000e+00> : vector<16xf32>
    %240 = vector.multi_reduction <add>, %239, %cst_99 [1] : vector<16x16xf32> to vector<16xf32>
    %241 = vector.shape_cast %240 : vector<16xf32> to vector<16x1xf32>
    %242 = tpu.reciprocal %241 {approx = true} : vector<16x1xf32> -> vector<16x1xf32>
    %243 = vector.broadcast %242 : vector<16x1xf32> to vector<16x16xf32>
    %244 = arith.mulf %239, %243 : vector<16x16xf32>
    %245 = arith.truncf %244 : vector<16x16xf32> to vector<16x16xbf16>
    %cst_100 = arith.constant dense<0.000000e+00> : vector<16x8xf32>
    %246 = tpu.matmul %245, %232, %cst_100 {dimension_numbers = #tpu.dot_dimension_numbers<[1], [0], [0], [1], [0, 0, 1, 1], [], []>} : vector<16x16xbf16>, vector<16x8xbf16>, vector<16x8xf32> -> vector<16x8xf32>
    %247 = arith.truncf %246 : vector<16x8xf32> to vector<16x8xbf16>
    %248 = vector.extract_strided_slice %216 {offsets = [0, 0], sizes = [8, 32], strides = [1, 1]} : vector<32x32xbf16> to vector<8x32xbf16>
    %cst_101 = arith.constant dense<0.000000e+00> : vector<16x32xf32>
    %249 = tpu.matmul %247, %248, %cst_101 {dimension_numbers = #tpu.dot_dimension_numbers<[1], [0], [0], [1], [0, 0, 1, 1], [], []>} : vector<16x8xbf16>, vector<8x32xbf16>, vector<16x32xf32> -> vector<16x32xf32>
    %250 = vector.extract_strided_slice %224 {offsets = [0, 8], sizes = [16, 8], strides = [1, 1]} : vector<16x32xbf16> to vector<16x8xbf16>
    %251 = vector.extract_strided_slice %227 {offsets = [8, 0], sizes = [8, 16], strides = [1, 1]} : vector<32x16xbf16> to vector<8x16xbf16>
    %252 = vector.extract_strided_slice %229 {offsets = [0, 8], sizes = [16, 8], strides = [1, 1]} : vector<16x32xbf16> to vector<16x8xbf16>
    %cst_102 = arith.constant dense<0.000000e+00> : vector<16x16xf32>
    %253 = tpu.matmul %250, %251, %cst_102 {dimension_numbers = #tpu.dot_dimension_numbers<[1], [0], [0], [1], [0, 0, 1, 1], [], []>} : vector<16x8xbf16>, vector<8x16xbf16>, vector<16x16xf32> -> vector<16x16xf32>
    %254 = arith.addf %253, %34 : vector<16x16xf32>
    %cst_103 = arith.constant dense<0xFF800000> : vector<16xf32>
    %255 = vector.multi_reduction <maximumf>, %254, %cst_103 [1] : vector<16x16xf32> to vector<16xf32>
    %256 = vector.shape_cast %255 : vector<16xf32> to vector<16x1xf32>
    %257 = vector.broadcast %256 : vector<16x1xf32> to vector<16x16xf32>
    %258 = arith.subf %254, %257 : vector<16x16xf32>
    %259 = math.exp %258 : vector<16x16xf32>
    %cst_104 = arith.constant dense<0.000000e+00> : vector<16xf32>
    %260 = vector.multi_reduction <add>, %259, %cst_104 [1] : vector<16x16xf32> to vector<16xf32>
    %261 = vector.shape_cast %260 : vector<16xf32> to vector<16x1xf32>
    %262 = tpu.reciprocal %261 {approx = true} : vector<16x1xf32> -> vector<16x1xf32>
    %263 = vector.broadcast %262 : vector<16x1xf32> to vector<16x16xf32>
    %264 = arith.mulf %259, %263 : vector<16x16xf32>
    %265 = arith.truncf %264 : vector<16x16xf32> to vector<16x16xbf16>
    %cst_105 = arith.constant dense<0.000000e+00> : vector<16x8xf32>
    %266 = tpu.matmul %265, %252, %cst_105 {dimension_numbers = #tpu.dot_dimension_numbers<[1], [0], [0], [1], [0, 0, 1, 1], [], []>} : vector<16x16xbf16>, vector<16x8xbf16>, vector<16x8xf32> -> vector<16x8xf32>
    %267 = arith.truncf %266 : vector<16x8xf32> to vector<16x8xbf16>
    %268 = vector.extract_strided_slice %216 {offsets = [8, 0], sizes = [8, 32], strides = [1, 1]} : vector<32x32xbf16> to vector<8x32xbf16>
    %cst_106 = arith.constant dense<0.000000e+00> : vector<16x32xf32>
    %269 = tpu.matmul %267, %268, %cst_106 {dimension_numbers = #tpu.dot_dimension_numbers<[1], [0], [0], [1], [0, 0, 1, 1], [], []>} : vector<16x8xbf16>, vector<8x32xbf16>, vector<16x32xf32> -> vector<16x32xf32>
    %270 = arith.addf %249, %269 : vector<16x32xf32>
    %271 = vector.extract_strided_slice %224 {offsets = [0, 16], sizes = [16, 8], strides = [1, 1]} : vector<16x32xbf16> to vector<16x8xbf16>
    %272 = vector.extract_strided_slice %227 {offsets = [16, 0], sizes = [8, 16], strides = [1, 1]} : vector<32x16xbf16> to vector<8x16xbf16>
    %273 = vector.extract_strided_slice %229 {offsets = [0, 16], sizes = [16, 8], strides = [1, 1]} : vector<16x32xbf16> to vector<16x8xbf16>
    %cst_107 = arith.constant dense<0.000000e+00> : vector<16x16xf32>
    %274 = tpu.matmul %271, %272, %cst_107 {dimension_numbers = #tpu.dot_dimension_numbers<[1], [0], [0], [1], [0, 0, 1, 1], [], []>} : vector<16x8xbf16>, vector<8x16xbf16>, vector<16x16xf32> -> vector<16x16xf32>
    %275 = arith.addf %274, %34 : vector<16x16xf32>
    %cst_108 = arith.constant dense<0xFF800000> : vector<16xf32>
    %276 = vector.multi_reduction <maximumf>, %275, %cst_108 [1] : vector<16x16xf32> to vector<16xf32>
    %277 = vector.shape_cast %276 : vector<16xf32> to vector<16x1xf32>
    %278 = vector.broadcast %277 : vector<16x1xf32> to vector<16x16xf32>
    %279 = arith.subf %275, %278 : vector<16x16xf32>
    %280 = math.exp %279 : vector<16x16xf32>
    %cst_109 = arith.constant dense<0.000000e+00> : vector<16xf32>
    %281 = vector.multi_reduction <add>, %280, %cst_109 [1] : vector<16x16xf32> to vector<16xf32>
    %282 = vector.shape_cast %281 : vector<16xf32> to vector<16x1xf32>
    %283 = tpu.reciprocal %282 {approx = true} : vector<16x1xf32> -> vector<16x1xf32>
    %284 = vector.broadcast %283 : vector<16x1xf32> to vector<16x16xf32>
    %285 = arith.mulf %280, %284 : vector<16x16xf32>
    %286 = arith.truncf %285 : vector<16x16xf32> to vector<16x16xbf16>
    %cst_110 = arith.constant dense<0.000000e+00> : vector<16x8xf32>
    %287 = tpu.matmul %286, %273, %cst_110 {dimension_numbers = #tpu.dot_dimension_numbers<[1], [0], [0], [1], [0, 0, 1, 1], [], []>} : vector<16x16xbf16>, vector<16x8xbf16>, vector<16x8xf32> -> vector<16x8xf32>
    %288 = arith.truncf %287 : vector<16x8xf32> to vector<16x8xbf16>
    %289 = vector.extract_strided_slice %216 {offsets = [16, 0], sizes = [8, 32], strides = [1, 1]} : vector<32x32xbf16> to vector<8x32xbf16>
    %cst_111 = arith.constant dense<0.000000e+00> : vector<16x32xf32>
    %290 = tpu.matmul %288, %289, %cst_111 {dimension_numbers = #tpu.dot_dimension_numbers<[1], [0], [0], [1], [0, 0, 1, 1], [], []>} : vector<16x8xbf16>, vector<8x32xbf16>, vector<16x32xf32> -> vector<16x32xf32>
    %291 = arith.addf %270, %290 : vector<16x32xf32>
    %292 = vector.extract_strided_slice %224 {offsets = [0, 24], sizes = [16, 8], strides = [1, 1]} : vector<16x32xbf16> to vector<16x8xbf16>
    %293 = vector.extract_strided_slice %227 {offsets = [24, 0], sizes = [8, 16], strides = [1, 1]} : vector<32x16xbf16> to vector<8x16xbf16>
    %294 = vector.extract_strided_slice %229 {offsets = [0, 24], sizes = [16, 8], strides = [1, 1]} : vector<16x32xbf16> to vector<16x8xbf16>
    %cst_112 = arith.constant dense<0.000000e+00> : vector<16x16xf32>
    %295 = tpu.matmul %292, %293, %cst_112 {dimension_numbers = #tpu.dot_dimension_numbers<[1], [0], [0], [1], [0, 0, 1, 1], [], []>} : vector<16x8xbf16>, vector<8x16xbf16>, vector<16x16xf32> -> vector<16x16xf32>
    %296 = arith.addf %295, %34 : vector<16x16xf32>
    %cst_113 = arith.constant dense<0xFF800000> : vector<16xf32>
    %297 = vector.multi_reduction <maximumf>, %296, %cst_113 [1] : vector<16x16xf32> to vector<16xf32>
    %298 = vector.shape_cast %297 : vector<16xf32> to vector<16x1xf32>
    %299 = vector.broadcast %298 : vector<16x1xf32> to vector<16x16xf32>
    %300 = arith.subf %296, %299 : vector<16x16xf32>
    %301 = math.exp %300 : vector<16x16xf32>
    %cst_114 = arith.constant dense<0.000000e+00> : vector<16xf32>
    %302 = vector.multi_reduction <add>, %301, %cst_114 [1] : vector<16x16xf32> to vector<16xf32>
    %303 = vector.shape_cast %302 : vector<16xf32> to vector<16x1xf32>
    %304 = tpu.reciprocal %303 {approx = true} : vector<16x1xf32> -> vector<16x1xf32>
    %305 = vector.broadcast %304 : vector<16x1xf32> to vector<16x16xf32>
    %306 = arith.mulf %301, %305 : vector<16x16xf32>
    %307 = arith.truncf %306 : vector<16x16xf32> to vector<16x16xbf16>
    %cst_115 = arith.constant dense<0.000000e+00> : vector<16x8xf32>
    %308 = tpu.matmul %307, %294, %cst_115 {dimension_numbers = #tpu.dot_dimension_numbers<[1], [0], [0], [1], [0, 0, 1, 1], [], []>} : vector<16x16xbf16>, vector<16x8xbf16>, vector<16x8xf32> -> vector<16x8xf32>
    %309 = arith.truncf %308 : vector<16x8xf32> to vector<16x8xbf16>
    %310 = vector.extract_strided_slice %216 {offsets = [24, 0], sizes = [8, 32], strides = [1, 1]} : vector<32x32xbf16> to vector<8x32xbf16>
    %cst_116 = arith.constant dense<0.000000e+00> : vector<16x32xf32>
    %311 = tpu.matmul %309, %310, %cst_116 {dimension_numbers = #tpu.dot_dimension_numbers<[1], [0], [0], [1], [0, 0, 1, 1], [], []>} : vector<16x8xbf16>, vector<8x32xbf16>, vector<16x32xf32> -> vector<16x32xf32>
    %312 = arith.addf %291, %311 : vector<16x32xf32>
    %313 = vector.broadcast %218 : vector<1x32xf32> to vector<16x32xf32>
    %314 = arith.addf %312, %313 : vector<16x32xf32>
    %315 = arith.addf %210, %314 : vector<16x32xf32>
    %c1_117 = arith.constant 1 : index
    %c0_118 = arith.constant 0 : index
    %c0_119 = arith.constant 0 : index
    %316 = vector.load %arg8[%c1_117, %c0_118, %c0_119] : memref<2x1x32xf32, #tpu.memory_space<vmem>>, vector<1x1x32xf32>
    %317 = vector.shape_cast %316 : vector<1x1x32xf32> to vector<1x32xf32>
    %c1_120 = arith.constant 1 : index
    %c0_121 = arith.constant 0 : index
    %c0_122 = arith.constant 0 : index
    %318 = vector.load %arg9[%c1_120, %c0_121, %c0_122] : memref<2x1x32xf32, #tpu.memory_space<vmem>>, vector<1x1x32xf32>
    %319 = vector.shape_cast %318 : vector<1x1x32xf32> to vector<1x32xf32>
    %cst_123 = arith.constant dense<0.000000e+00> : vector<16xf32>
    %320 = vector.multi_reduction <add>, %315, %cst_123 [1] : vector<16x32xf32> to vector<16xf32>
    %321 = vector.shape_cast %320 : vector<16xf32> to vector<16x1xf32>
    %cst_124 = arith.constant 3.200000e+01 : f32
    %322 = vector.broadcast %cst_124 : f32 to vector<16x1xf32>
    %323 = arith.divf %321, %322 : vector<16x1xf32>
    %324 = vector.broadcast %323 : vector<16x1xf32> to vector<16x32xf32>
    %325 = arith.subf %315, %324 : vector<16x32xf32>
    %326 = arith.mulf %325, %325 : vector<16x32xf32>
    %cst_125 = arith.constant dense<0.000000e+00> : vector<16xf32>
    %327 = vector.multi_reduction <add>, %326, %cst_125 [1] : vector<16x32xf32> to vector<16xf32>
    %328 = vector.shape_cast %327 : vector<16xf32> to vector<16x1xf32>
    %cst_126 = arith.constant 3.200000e+01 : f32
    %329 = vector.broadcast %cst_126 : f32 to vector<16x1xf32>
    %330 = arith.divf %328, %329 : vector<16x1xf32>
    %331 = vector.broadcast %323 : vector<16x1xf32> to vector<16x32xf32>
    %332 = arith.subf %315, %331 : vector<16x32xf32>
    %cst_127 = arith.constant 9.99999974E-6 : f32
    %333 = vector.broadcast %cst_127 : f32 to vector<16x1xf32>
    %334 = arith.addf %330, %333 : vector<16x1xf32>
    %335 = math.rsqrt %334 : vector<16x1xf32>
    %336 = vector.broadcast %335 : vector<16x1xf32> to vector<16x32xf32>
    %337 = arith.mulf %332, %336 : vector<16x32xf32>
    %338 = vector.broadcast %317 : vector<1x32xf32> to vector<16x32xf32>
    %339 = arith.mulf %337, %338 : vector<16x32xf32>
    %340 = vector.broadcast %319 : vector<1x32xf32> to vector<16x32xf32>
    %341 = arith.addf %339, %340 : vector<16x32xf32>
    %342 = arith.truncf %341 : vector<16x32xf32> to vector<16x32xbf16>
    %c1_128 = arith.constant 1 : index
    %c0_129 = arith.constant 0 : index
    %c0_130 = arith.constant 0 : index
    %343 = vector.load %arg10[%c1_128, %c0_129, %c0_130] : memref<2x32x32xbf16, #tpu.memory_space<vmem>>, vector<1x32x32xbf16>
    %344 = vector.shape_cast %343 : vector<1x32x32xbf16> to vector<32x32xbf16>
    %cst_131 = arith.constant dense<0.000000e+00> : vector<16x32xf32>
    %345 = tpu.matmul %342, %344, %cst_131 {dimension_numbers = #tpu.dot_dimension_numbers<[1], [0], [0], [1], [0, 0, 1, 1], [], []>} : vector<16x32xbf16>, vector<32x32xbf16>, vector<16x32xf32> -> vector<16x32xf32>
    %c1_132 = arith.constant 1 : index
    %c0_133 = arith.constant 0 : index
    %c0_134 = arith.constant 0 : index
    %346 = vector.load %arg11[%c1_132, %c0_133, %c0_134] : memref<2x1x32xf32, #tpu.memory_space<vmem>>, vector<1x1x32xf32>
    %347 = vector.shape_cast %346 : vector<1x1x32xf32> to vector<1x32xf32>
    %348 = vector.broadcast %347 : vector<1x32xf32> to vector<16x32xf32>
    %349 = arith.addf %345, %348 : vector<16x32xf32>
    %cst_135 = arith.constant 0.000000e+00 : f32
    %350 = vector.broadcast %cst_135 : f32 to vector<16x32xf32>
    %351 = arith.maximumf %349, %350 : vector<16x32xf32>
    %352 = arith.truncf %351 : vector<16x32xf32> to vector<16x32xbf16>
    %c1_136 = arith.constant 1 : index
    %c0_137 = arith.constant 0 : index
    %c0_138 = arith.constant 0 : index
    %353 = vector.load %arg12[%c1_136, %c0_137, %c0_138] : memref<2x32x32xbf16, #tpu.memory_space<vmem>>, vector<1x32x32xbf16>
    %354 = vector.shape_cast %353 : vector<1x32x32xbf16> to vector<32x32xbf16>
    %cst_139 = arith.constant dense<0.000000e+00> : vector<16x32xf32>
    %355 = tpu.matmul %352, %354, %cst_139 {dimension_numbers = #tpu.dot_dimension_numbers<[1], [0], [0], [1], [0, 0, 1, 1], [], []>} : vector<16x32xbf16>, vector<32x32xbf16>, vector<16x32xf32> -> vector<16x32xf32>
    %c1_140 = arith.constant 1 : index
    %c0_141 = arith.constant 0 : index
    %c0_142 = arith.constant 0 : index
    %356 = vector.load %arg13[%c1_140, %c0_141, %c0_142] : memref<2x1x32xf32, #tpu.memory_space<vmem>>, vector<1x1x32xf32>
    %357 = vector.shape_cast %356 : vector<1x1x32xf32> to vector<1x32xf32>
    %358 = vector.broadcast %357 : vector<1x32xf32> to vector<16x32xf32>
    %359 = arith.addf %355, %358 : vector<16x32xf32>
    %360 = arith.addf %341, %359 : vector<16x32xf32>
    %c1_143 = arith.constant 1 : index
    %c0_144 = arith.constant 0 : index
    %c0_145 = arith.constant 0 : index
    %361 = vector.load %arg14[%c1_143, %c0_144, %c0_145] : memref<2x1x32xf32, #tpu.memory_space<vmem>>, vector<1x1x32xf32>
    %362 = vector.shape_cast %361 : vector<1x1x32xf32> to vector<1x32xf32>
    %c1_146 = arith.constant 1 : index
    %c0_147 = arith.constant 0 : index
    %c0_148 = arith.constant 0 : index
    %363 = vector.load %arg15[%c1_146, %c0_147, %c0_148] : memref<2x1x32xf32, #tpu.memory_space<vmem>>, vector<1x1x32xf32>
    %364 = vector.shape_cast %363 : vector<1x1x32xf32> to vector<1x32xf32>
    %cst_149 = arith.constant dense<0.000000e+00> : vector<16xf32>
    %365 = vector.multi_reduction <add>, %360, %cst_149 [1] : vector<16x32xf32> to vector<16xf32>
    %366 = vector.shape_cast %365 : vector<16xf32> to vector<16x1xf32>
    %cst_150 = arith.constant 3.200000e+01 : f32
    %367 = vector.broadcast %cst_150 : f32 to vector<16x1xf32>
    %368 = arith.divf %366, %367 : vector<16x1xf32>
    %369 = vector.broadcast %368 : vector<16x1xf32> to vector<16x32xf32>
    %370 = arith.subf %360, %369 : vector<16x32xf32>
    %371 = arith.mulf %370, %370 : vector<16x32xf32>
    %cst_151 = arith.constant dense<0.000000e+00> : vector<16xf32>
    %372 = vector.multi_reduction <add>, %371, %cst_151 [1] : vector<16x32xf32> to vector<16xf32>
    %373 = vector.shape_cast %372 : vector<16xf32> to vector<16x1xf32>
    %cst_152 = arith.constant 3.200000e+01 : f32
    %374 = vector.broadcast %cst_152 : f32 to vector<16x1xf32>
    %375 = arith.divf %373, %374 : vector<16x1xf32>
    %376 = vector.broadcast %368 : vector<16x1xf32> to vector<16x32xf32>
    %377 = arith.subf %360, %376 : vector<16x32xf32>
    %cst_153 = arith.constant 9.99999974E-6 : f32
    %378 = vector.broadcast %cst_153 : f32 to vector<16x1xf32>
    %379 = arith.addf %375, %378 : vector<16x1xf32>
    %380 = math.rsqrt %379 : vector<16x1xf32>
    %381 = vector.broadcast %380 : vector<16x1xf32> to vector<16x32xf32>
    %382 = arith.mulf %377, %381 : vector<16x32xf32>
    %383 = vector.broadcast %362 : vector<1x32xf32> to vector<16x32xf32>
    %384 = arith.mulf %382, %383 : vector<16x32xf32>
    %385 = vector.broadcast %364 : vector<1x32xf32> to vector<16x32xf32>
    %386 = arith.addf %384, %385 : vector<16x32xf32>
    %387 = arith.truncf %386 : vector<16x32xf32> to vector<16x32xbf16>
    %c0_154 = arith.constant 0 : index
    %c0_155 = arith.constant 0 : index
    %388 = vector.load %arg16[%c0_154, %c0_155] : memref<32x128xbf16, #tpu.memory_space<vmem>>, vector<32x128xbf16>
    %cst_156 = arith.constant dense<0.000000e+00> : vector<16x128xf32>
    %389 = tpu.matmul %387, %388, %cst_156 {dimension_numbers = #tpu.dot_dimension_numbers<[1], [0], [0], [1], [0, 0, 1, 1], [], []>} : vector<16x32xbf16>, vector<32x128xbf16>, vector<16x128xf32> -> vector<16x128xf32>
    %c0_157 = arith.constant 0 : index
    %c0_158 = arith.constant 0 : index
    %390 = vector.load %arg17[%c0_157, %c0_158] : memref<1x128xf32, #tpu.memory_space<vmem>>, vector<1x128xf32>
    %391 = vector.broadcast %390 : vector<1x128xf32> to vector<16x128xf32>
    %392 = arith.addf %389, %391 : vector<16x128xf32>
    %c0_159 = arith.constant 0 : index
    %c0_160 = arith.constant 0 : index
    %393 = vector.load %arg18[%c0_159, %c0_160] : memref<16x128xf32, #tpu.memory_space<vmem>>, vector<16x128xf32>
    tpu.vector_store %arg18[%c0_159, %c0_160], %392 {strides = array<i32>} : memref<16x128xf32, #tpu.memory_space<vmem>>, vector<16x128xf32>,
    return
  }
}

</mosaic_0001>

<bundles_post_ra>
// kernel: transformer_forward.1
= control target key start
LH: loop header
LB: loop body
LE: loop exit
PB: predicated region body
PF: predicated region fallthrough
CT: control target
= control target key end

     0   :  { %vm1224_vm0 = vcmask 236544   ;;  %vm1228_vm1 = vcmask 1045504   ;;  %vm1229_vm2 = vcmask 1046528   ;;  %vm4707_vm3 = vmmov 0   ;;  %s4710_s19 = smov 120   ;;  %s4712_s20 = smov 112   ;;  %s5765_s1 = inlined_call_operand.vmem [shape: bf16[2205,32], index: 1, kind: input, shape index: {}]   ;;  %s5766_s0 = inlined_call_operand.vmem [shape: f32[16,2205], index: 0, kind: input, shape index: {}]   ;;  %s5767_s2 = inlined_call_operand.vmem [shape: f32[1,32], index: 2, kind: input, shape index: {}]   ;;  %s5768_s4 = inlined_call_operand.vmem [shape: bf16[2,32,96], index: 4, kind: input, shape index: {}]   ;;  %s5769_s3 = inlined_call_operand.vmem [shape: f32[16,32], index: 3, kind: input, shape index: {}]   ;;  %s5770_s5 = inlined_call_operand.vmem [shape: f32[2,1,96], index: 5, kind: input, shape index: {}]   ;;  %s5771_s6 = inlined_call_operand.vmem [shape: bf16[2,32,32], index: 6, kind: input, shape index: {}]   ;;  %s5772_s7 = inlined_call_operand.vmem [shape: f32[2,1,32], index: 7, kind: input, shape index: {}]   ;;  %s5773_s10 = inlined_call_operand.vmem [shape: bf16[2,32,32], index: 10, kind: input, shape index: {}]   ;;  %s5774_s8 = inlined_call_operand.vmem [shape: f32[2,1,32], index: 8, kind: input, shape index: {}]   ;;  %s5775_s9 = inlined_call_operand.vmem [shape: f32[2,1,32], index: 9, kind: input, shape index: {}]   ;;  %s5776_s12 = inlined_call_operand.vmem [shape: bf16[2,32,32], index: 12, kind: input, shape index: {}]   ;;  %s5777_s11 = inlined_call_operand.vmem [shape: f32[2,1,32], index: 11, kind: input, shape index: {}]   ;;  %s5778_s13 = inlined_call_operand.vmem [shape: f32[2,1,32], index: 13, kind: input, shape index: {}]   ;;  %s5779_s14 = inlined_call_operand.vmem [shape: f32[2,1,32], index: 14, kind: input, shape index: {}]   ;;  %s5780_s15 = inlined_call_operand.vmem [shape: f32[2,1,32], index: 15, kind: input, shape index: {}]   ;;  %s5781_s16 = inlined_call_operand.vmem [shape: bf16[32,128], index: 16, kind: input, shape index: {}]   ;;  %s5782_s17 = inlined_call_operand.vmem [shape: f32[1,128], index: 17, kind: input, shape index: {}]   ;;  %s5783_s18 = inlined_call_operand.vmem [shape: f32[16,128], index: 18, kind: output, shape index: {}]  }
   0x1   :  { %5786 = sst [smem:[#allocation2_spill]] %s5765_s1  ;;  %vm1668_vm4 = vcmask 261120   ;;  %vm1760_vm5 = vcmask 1043456   ;;  %vm1756_vm6 = vcmask 64512   ;;  %vm1805_vm13 = vcmask 130048   ;;  %s4713_s21 = smov 56  }
   0x2   :  { %5787 = sst [smem:[#allocation3_spill]] %s5766_s0  ;;  %s5789_s29 = sld [smem:[#allocation2_spill]] }
   0x3   :  { %5788 = sst [smem:[#allocation4_spill]] %s5767_s2  ;;  %s5790_s22 = sld [smem:[#allocation3_spill]] }
   0x4   :  { %s4711_s0 = smov 64   ;;  %s4714_s24 = smov 104  }
   0x5   :  { %s4715_s25 = smov 48   ;;  %s4716_s28 = smov 40  }
   0x8   :  { %v4472_v0 = vld [vmem:[%s5789_s29 + $0x40] sm:$0xff]   ;;  %v4476_v4 = vld [vmem:[%s5789_s29 + $0x48] sm:$0xff]   ;;  %v4480_v8 = vld [vmem:[%s5789_s29 + $0x50] sm:$0xff]  }
   0x9   :  { %v4473_v1 = vld [vmem:[%s5789_s29] sm:$0xff]   ;;  %4014 = vmatprep.subr.bf16.mxu0 %v4472_v0  ;;  %v4477_v5 = vld [vmem:[%s5789_s29 + $0x8] sm:$0xff]   ;;  %v4481_v9 = vld [vmem:[%s5789_s29 + $0x10] sm:$0xff]  }
   0xa   :  { %v4474_v2 = vld [vmem:[%s5789_s29 + $0xc0] sm:$0xff]   ;;  %4015 = vmatpush3.bf16.msra.mxu0 %v4473_v1  ;;  %v4478_v6 = vld [vmem:[%s5789_s29 + $0xc8] sm:$0xff]   ;;  %v4482_v10 = vld [vmem:[%s5789_s29 + $0xd0] sm:$0xff]  }
   0xb   :  { %v4475_v3 = vld [vmem:[%s5789_s29 + $0x80] sm:$0xff]   ;;  %4036 = vmatprep.subr.bf16.mxu1 %v4474_v2  ;;  %4016 = vmatprep.subr.bf16.mxu0 %v4476_v4  ;;  %v4479_v7 = vld [vmem:[%s5789_s29 + $0x88] sm:$0xff]   ;;  %v4483_v11 = vld [vmem:[%s5789_s29 + $0x90] sm:$0xff]  }
   0xc   :  { %4037 = vmatpush3.bf16.msra.mxu1 %v4475_v3  ;;  %v4484_v12 = vld [vmem:[%s5789_s29 + $0x58] sm:$0xff]   ;;  %v4488_v16 = vld [vmem:[%s5789_s29 + $0x60] sm:$0xff]   ;;  %v4492_v20 = vld [vmem:[%s5789_s29 + $0x68] sm:$0xff]  }
   0xd   :  { %4038 = vmatprep.subr.bf16.mxu1 %v4478_v6  ;;  %v4485_v13 = vld [vmem:[%s5789_s29 + $0x18] sm:$0xff]   ;;  %v4489_v17 = vld [vmem:[%s5789_s29 + $0x20] sm:$0xff]   ;;  %v4493_v21 = vld [vmem:[%s5789_s29 + $0x28] sm:$0xff]  }
   0xe   :  { %4017 = vmatpush3.bf16.msra.mxu0 %v4477_v5  ;;  %v4486_v14 = vld [vmem:[%s5789_s29 + $0xd8] sm:$0xff]   ;;  %v4490_v18 = vld [vmem:[%s5789_s29 + $0xe0] sm:$0xff]   ;;  %v4494_v22 = vld [vmem:[%s5789_s29 + $0xe8] sm:$0xff]  }
   0xf   :  { %4018 = vmatprep.subr.bf16.mxu0 %v4480_v8  ;;  %v4487_v15 = vld [vmem:[%s5789_s29 + $0x98] sm:$0xff]   ;;  %v4491_v19 = vld [vmem:[%s5789_s29 + $0xa0] sm:$0xff]   ;;  %v4495_v23 = vld [vmem:[%s5789_s29 + $0xa8] sm:$0xff]  }
  0x10   :  { %4039 = vmatpush3.bf16.msra.mxu1 %v4479_v7  ;;  %v4496_v24 = vld [vmem:[%s5789_s29 + $0x70] sm:$0xff]   ;;  %v4500_v28 = vld [vmem:[%s5789_s29 + $0x78] sm:$0xff]   ;;  %v61_v31 = vld [vmem:[%s5790_s22 + $0x8] sm:$0xff] }
  0x11   :  { %4040 = vmatprep.subr.bf16.mxu1 %v4482_v10  ;;  %v4497_v25 = vld [vmem:[%s5789_s29 + $0x30] sm:$0xff]   ;;  %v4501_v29 = vld [vmem:[%s5789_s29 + $0x38] sm:$0xff]   ;;  %v60_v35 = vld [vmem:[%s5790_s22] sm:$0xff] }
  0x12   :  { %4019 = vmatpush3.bf16.msra.mxu0 %v4481_v9  ;;  %v4498_v26 = vld [vmem:[%s5789_s29 + $0xf0] sm:$0xff]   ;;  %v4502_v30 = vld [vmem:[%s5789_s29 + $0xf8] sm:$0xff]   ;;  %v4504_v38 = vld [vmem:[%s5789_s29 + $0x140] sm:$0xff]  }
  0x13   :  { %4020 = vmatprep.subr.bf16.mxu0 %v4484_v12  ;;  %v4499_v27 = vld [vmem:[%s5789_s29 + $0xb0] sm:$0xff]   ;;  %v79_v32 = vld [vmem:[%s5790_s22 + $0x98] sm:$0xff]  ;;  %v81_v40 = vld [vmem:[%s5790_s22 + $0xa8] sm:$0xff] }
  0x14   :  { %4041 = vmatpush3.bf16.msra.mxu1 %v4483_v11  ;;  %v97_v33 = vpack.c.bf16 %v79_v32, %v61_v31  ;;  %v4503_v34 = vld [vmem:[%s5789_s29 + $0xb8] sm:$0xff]   ;;  %v78_v36 = vld [vmem:[%s5790_s22 + $0x90] sm:$0xff]  ;;  %v4505_v42 = vld [vmem:[%s5789_s29 + $0x100] sm:$0xff]  }
  0x15   :  { %4042 = vmatprep.subr.bf16.mxu1 %v4486_v14  ;;  %v96_v37 = vpack.c.bf16 %v78_v36, %v60_v35  ;;  %v63_v39 = vld [vmem:[%s5790_s22 + $0x18] sm:$0xff]  ;;  %v62_v43 = vld [vmem:[%s5790_s22 + $0x10] sm:$0xff]  ;;  %v80_v44 = vld [vmem:[%s5790_s22 + $0xa0] sm:$0xff] }
  0x16   :  { %4021 = vmatpush3.bf16.msra.mxu0 %v4485_v13  ;;  %1267 = vmatprep.mubr.bf16.mxu0 %v97_v33  ;;  %v99_v41 = vpack.c.bf16 %v81_v40, %v63_v39  ;;  %v98_v45 = vpack.c.bf16 %v80_v44, %v62_v43  ;;  %v4506_v46 = vld [vmem:[%s5789_s29 + $0x1c0] sm:$0xff]   ;;  %v4508_v48 = vld [vmem:[%s5789_s29 + $0x148] sm:$0xff]   ;;  %v4512_v52 = vld [vmem:[%s5789_s29 + $0x150] sm:$0xff]  }
  0x17   :  { %4022 = vmatprep.subr.bf16.mxu0 %v4488_v16  ;;  %v4507_v47 = vld [vmem:[%s5789_s29 + $0x180] sm:$0xff]   ;;  %v4509_v49 = vld [vmem:[%s5789_s29 + $0x108] sm:$0xff]   ;;  %v4513_v53 = vld [vmem:[%s5789_s29 + $0x110] sm:$0xff]  }
  0x18   :  { %4043 = vmatpush3.bf16.msra.mxu1 %v4487_v15  ;;  %1308 = vmatprep.mubr.bf16.mxu1 %v99_v41  ;;  %v4510_v50 = vld [vmem:[%s5789_s29 + $0x1c8] sm:$0xff]   ;;  %v4514_v54 = vld [vmem:[%s5789_s29 + $0x1d0] sm:$0xff]   ;;  %v4516_v56 = vld [vmem:[%s5789_s29 + $0x158] sm:$0xff]  }
  0x19   :  { %4044 = vmatprep.subr.bf16.mxu1 %v4490_v18  ;;  %v4511_v51 = vld [vmem:[%s5789_s29 + $0x188] sm:$0xff]   ;;  %v4515_v55 = vld [vmem:[%s5789_s29 + $0x190] sm:$0xff]   ;;  %v4517_v57 = vld [vmem:[%s5789_s29 + $0x118] sm:$0xff]  }
  0x1a   :  { %4023 = vmatpush3.bf16.msra.mxu0 %v4489_v17  ;;  %v4518_v58 = vld [vmem:[%s5789_s29 + $0x1d8] sm:$0xff]   ;;  %v4520_v60 = vld [vmem:[%s5789_s29 + $0x160] sm:$0xff]   ;;  %v4524_v0 = vld [vmem:[%s5789_s29 + $0x168] sm:$0xff]  }
  0x1b   :  { %4024 = vmatprep.subr.bf16.mxu0 %v4492_v20  ;;  %v4519_v59 = vld [vmem:[%s5789_s29 + $0x198] sm:$0xff]   ;;  %v4521_v61 = vld [vmem:[%s5789_s29 + $0x120] sm:$0xff]   ;;  %v4525_v1 = vld [vmem:[%s5789_s29 + $0x128] sm:$0xff]  }
  0x1c   :  { %4045 = vmatpush3.bf16.msra.mxu1 %v4491_v19  ;;  %v4522_v62 = vld [vmem:[%s5789_s29 + $0x1e0] sm:$0xff]   ;;  %v4526_v2 = vld [vmem:[%s5789_s29 + $0x1e8] sm:$0xff]   ;;  %v4528_v4 = vld [vmem:[%s5789_s29 + $0x170] sm:$0xff]  }
  0x1d   :  { %4046 = vmatprep.subr.bf16.mxu1 %v4494_v22  ;;  %v4523_v63 = vld [vmem:[%s5789_s29 + $0x1a0] sm:$0xff]   ;;  %v4527_v3 = vld [vmem:[%s5789_s29 + $0x1a8] sm:$0xff]   ;;  %v4529_v5 = vld [vmem:[%s5789_s29 + $0x130] sm:$0xff]  }
  0x1e   :  { %4025 = vmatpush3.bf16.msra.mxu0 %v4493_v21  ;;  %v4530_v6 = vld [vmem:[%s5789_s29 + $0x1f0] sm:$0xff]   ;;  %v4532_v8 = vld [vmem:[%s5789_s29 + $0x178] sm:$0xff]   ;;  %v65_v11 = vld [vmem:[%s5790_s22 + $0x28] sm:$0xff] }
  0x1f   :  { %4026 = vmatprep.subr.bf16.mxu0 %v4496_v24  ;;  %v4531_v7 = vld [vmem:[%s5789_s29 + $0x1b0] sm:$0xff]   ;;  %v4533_v9 = vld [vmem:[%s5789_s29 + $0x138] sm:$0xff]   ;;  %v64_v15 = vld [vmem:[%s5790_s22 + $0x20] sm:$0xff] }
  0x20   :  { %4047 = vmatpush3.bf16.msra.mxu1 %v4495_v23  ;;  %v4534_v10 = vld [vmem:[%s5789_s29 + $0x1f8] sm:$0xff]   ;;  %v82_v16 = vld [vmem:[%s5790_s22 + $0xb0] sm:$0xff]  ;;  %v4536_v18 = vld [vmem:[%s5789_s29 + $0x240] sm:$0xff]  }
  0x21   :  { %4048 = vmatprep.subr.bf16.mxu1 %v4498_v26  ;;  %v83_v12 = vld [vmem:[%s5790_s22 + $0xb8] sm:$0xff]  ;;  %v100_v17 = vpack.c.bf16 %v82_v16, %v64_v15  ;;  %v85_v20 = vld [vmem:[%s5790_s22 + $0xc8] sm:$0xff]  ;;  %v4537_v22 = vld [vmem:[%s5789_s29 + $0x200] sm:$0xff]  }
  0x22   :  { %4027 = vmatpush3.bf16.msra.mxu0 %v4497_v25  ;;  %v101_v13 = vpack.c.bf16 %v83_v12, %v65_v11  ;;  %v4535_v14 = vld [vmem:[%s5789_s29 + $0x1b8] sm:$0xff]   ;;  %v66_v23 = vld [vmem:[%s5790_s22 + $0x30] sm:$0xff]  ;;  %v84_v24 = vld [vmem:[%s5790_s22 + $0xc0] sm:$0xff] }
  0x23   :  { %4028 = vmatprep.subr.bf16.mxu0 %v4500_v28  ;;  %v67_v19 = vld [vmem:[%s5790_s22 + $0x38] sm:$0xff]  ;;  %v102_v25 = vpack.c.bf16 %v84_v24, %v66_v23  ;;  %v4538_v26 = vld [vmem:[%s5789_s29 + $0x2c0] sm:$0xff]   ;;  %v4540_v28 = vld [vmem:[%s5789_s29 + $0x248] sm:$0xff]  }
  0x24   :  { %4049 = vmatpush3.bf16.msra.mxu1 %v4499_v27  ;;  %v103_v21 = vpack.c.bf16 %v85_v20, %v67_v19  ;;  %v4539_v27 = vld [vmem:[%s5789_s29 + $0x280] sm:$0xff]   ;;  %v4543_v31 = vld [vmem:[%s5789_s29 + $0x288] sm:$0xff]   ;;  %v4544_v32 = vld [vmem:[%s5789_s29 + $0x250] sm:$0xff]  }
  0x25   :  { %4050 = vmatprep.subr.bf16.mxu1 %v4502_v30  ;;  %v4542_v30 = vld [vmem:[%s5789_s29 + $0x2c8] sm:$0xff]   ;;  %v4545_v33 = vld [vmem:[%s5789_s29 + $0x210] sm:$0xff]   ;;  %v4548_v36 = vld [vmem:[%s5789_s29 + $0x258] sm:$0xff]  }
  0x26   :  { %4029 = vmatpush3.bf16.msra.mxu0 %v4501_v29  ;;  %v4541_v29 = vld [vmem:[%s5789_s29 + $0x208] sm:$0xff]   ;;  %v4547_v35 = vld [vmem:[%s5789_s29 + $0x290] sm:$0xff]   ;;  %v4551_v39 = vld [vmem:[%s5789_s29 + $0x298] sm:$0xff]  }
  0x27   :  { %4058 = vmatprep.subr.bf16.mxu0 %v4504_v38  ;;  %v4550_v38 = vld [vmem:[%s5789_s29 + $0x2d8] sm:$0xff]   ;;  %v4552_v40 = vld [vmem:[%s5789_s29 + $0x260] sm:$0xff]   ;;  %v4556_v44 = vld [vmem:[%s5789_s29 + $0x268] sm:$0xff]  }
  0x28   :  { %4051 = vmatpush3.bf16.msra.mxu1 %v4503_v34  ;;  %v4546_v34 = vld [vmem:[%s5789_s29 + $0x2d0] sm:$0xff]   ;;  %v4553_v41 = vld [vmem:[%s5789_s29 + $0x220] sm:$0xff]   ;;  %v4575_v11 = vld [vmem:[%s5789_s29 + $0x388] sm:$0xff]  }
  0x29   :  { %1268 = vmatmul.mubr.bf16.vlgmr.msra.gmra.mrb[0].mxu0 %v96_v37  ;;  %4080 = vmatprep.subr.bf16.mxu1 %v4506_v46  ;;  %v4549_v37 = vld [vmem:[%s5789_s29 + $0x218] sm:$0xff]   ;;  %v4555_v43 = vld [vmem:[%s5789_s29 + $0x2a0] sm:$0xff]   ;;  %v4558_v46 = vld [vmem:[%s5789_s29 + $0x2e8] sm:$0xff]  }
  0x2a   :  { %4059 = vmatpush3.bf16.msra.mxu0 %v4505_v42  ;;  %1349 = vmatprep.mubr.bf16.mxu0 %v101_v13  ;;  %v4554_v42 = vld [vmem:[%s5789_s29 + $0x2e0] sm:$0xff]   ;;  %v4576_v12 = vld [vmem:[%s5789_s29 + $0x350] sm:$0xff]   ;;  %v4580_v16 = vld [vmem:[%s5789_s29 + $0x358] sm:$0xff]  }
  0x2b   :  { %1309 = vmatmul.mubr.bf16.vlgmr.msra.gmra.mrb[0].mxu1 %v98_v45  ;;  %4060 = vmatprep.subr.bf16.mxu0 %v4508_v48  ;;  %v4557_v45 = vld [vmem:[%s5789_s29 + $0x228] sm:$0xff]   ;;  %v4560_v48 = vld [vmem:[%s5789_s29 + $0x270] sm:$0xff]   ;;  %v4583_v19 = vld [vmem:[%s5789_s29 + $0x398] sm:$0xff]  }
  0x2c   :  { %4081 = vmatpush3.bf16.msra.mxu1 %v4507_v47  ;;  %1390 = vmatprep.mubr.bf16.mxu1 %v103_v21  ;;  %v4559_v47 = vld [vmem:[%s5789_s29 + $0x2a8] sm:$0xff]   ;;  %v4577_v13 = vld [vmem:[%s5789_s29 + $0x310] sm:$0xff]   ;;  %v4584_v20 = vld [vmem:[%s5789_s29 + $0x360] sm:$0xff]  }
  0x2d   :  { %4082 = vmatprep.subr.bf16.mxu1 %v4510_v50  ;;  %v4562_v50 = vld [vmem:[%s5789_s29 + $0x2f0] sm:$0xff]   ;;  %v4585_v21 = vld [vmem:[%s5789_s29 + $0x320] sm:$0xff]   ;;  %v4588_v24 = vld [vmem:[%s5789_s29 + $0x368] sm:$0xff]  }
  0x2e   :  { %4061 = vmatpush3.bf16.msra.mxu0 %v4509_v49  ;;  %v4561_v49 = vld [vmem:[%s5789_s29 + $0x230] sm:$0xff]   ;;  %v4587_v23 = vld [vmem:[%s5789_s29 + $0x3a0] sm:$0xff]  }
  0x2f   :  { %4062 = vmatprep.subr.bf16.mxu0 %v4512_v52  ;;  %v4564_v52 = vld [vmem:[%s5789_s29 + $0x278] sm:$0xff]   ;;  %v4579_v15 = vld [vmem:[%s5789_s29 + $0x390] sm:$0xff]  }
  0x30   :  { %4083 = vmatpush3.bf16.msra.mxu1 %v4511_v51  ;;  %v4563_v51 = vld [vmem:[%s5789_s29 + $0x2b0] sm:$0xff]  }
  0x31   :  { %4084 = vmatprep.subr.bf16.mxu1 %v4514_v54  ;;  %v4566_v54 = vld [vmem:[%s5789_s29 + $0x2f8] sm:$0xff]  }
  0x32   :  { %4063 = vmatpush3.bf16.msra.mxu0 %v4513_v53  ;;  %v4565_v53 = vld [vmem:[%s5789_s29 + $0x238] sm:$0xff]  }
  0x33   :  { %4064 = vmatprep.subr.bf16.mxu0 %v4516_v56  ;;  %v87_v56 = vld [vmem:[%s5790_s22 + $0xd8] sm:$0xff] }
  0x34   :  { %4085 = vmatpush3.bf16.msra.mxu1 %v4515_v55  ;;  %v69_v55 = vld [vmem:[%s5790_s22 + $0x48] sm:$0xff] }
  0x35   :  { %4086 = vmatprep.subr.bf16.mxu1 %v4518_v58  ;;  %v4567_v58 = vld [vmem:[%s5789_s29 + $0x2b8] sm:$0xff]  }
  0x36   :  { %4065 = vmatpush3.bf16.msra.mxu0 %v4517_v57  ;;  %v105_v57 = vpack.c.bf16 %v87_v56, %v69_v55  ;;  %v4604_v56 = vld [vmem:[%s5789_s29 + $0x420] sm:$0xff]  }
  0x37   :  { %4066 = vmatprep.subr.bf16.mxu0 %v4520_v60  ;;  %v86_v60 = vld [vmem:[%s5790_s22 + $0xd0] sm:$0xff] }
  0x38   :  { %4087 = vmatpush3.bf16.msra.mxu1 %v4519_v59  ;;  %v68_v59 = vld [vmem:[%s5790_s22 + $0x40] sm:$0xff] }
  0x39   :  { %4088 = vmatprep.subr.bf16.mxu1 %v4522_v62  ;;  %v4568_v62 = vld [vmem:[%s5789_s29 + $0x340] sm:$0xff]  }
  0x3a   :  { %4067 = vmatpush3.bf16.msra.mxu0 %v4521_v61  ;;  %v104_v61 = vpack.c.bf16 %v86_v60, %v68_v59  ;;  %v4607_v59 = vld [vmem:[%s5789_s29 + $0x438] sm:$0xff]   ;;  %v4705_v60 = vmov 65535  }
  0x3b   :  { %4068 = vmatprep.subr.bf16.mxu0 %v4524_v0  ;;  %v89_v0 = vld [vmem:[%s5790_s22 + $0xe8] sm:$0xff] }
  0x3c   :  { %4089 = vmatpush3.bf16.msra.mxu1 %v4523_v63  ;;  %v71_v63 = vld [vmem:[%s5790_s22 + $0x58] sm:$0xff] }
  0x3d   :  { %4090 = vmatprep.subr.bf16.mxu1 %v4526_v2  ;;  %v4569_v2 = vld [vmem:[%s5789_s29 + $0x300] sm:$0xff]  }
  0x3e   :  { %4069 = vmatpush3.bf16.msra.mxu0 %v4525_v1  ;;  %v107_v1 = vpack.c.bf16 %v89_v0, %v71_v63  ;;  %v4609_v63 = vld [vmem:[%s5789_s29 + $0x448] sm:$0x7f]  }
  0x3f   :  { %4070 = vmatprep.subr.bf16.mxu0 %v4528_v4  ;;  %v88_v4 = vld [vmem:[%s5790_s22 + $0xe0] sm:$0xff] }
  0x40   :  { %4091 = vmatpush3.bf16.msra.mxu1 %v4527_v3  ;;  %v70_v3 = vld [vmem:[%s5790_s22 + $0x50] sm:$0xff] }
  0x41   :  { %4092 = vmatprep.subr.bf16.mxu1 %v4530_v6  ;;  %v4570_v6 = vld [vmem:[%s5789_s29 + $0x3c0] sm:$0xff]  }
  0x42   :  { %4071 = vmatpush3.bf16.msra.mxu0 %v4529_v5  ;;  %v106_v5 = vpack.c.bf16 %v88_v4, %v70_v3  ;;  %v94_v3 = vld [vmem:[%s5790_s22 + $0x110] sm:$0xff] }
  0x43   :  { %4072 = vmatprep.subr.bf16.mxu0 %v4532_v8  ;;  %v4572_v8 = vld [vmem:[%s5789_s29 + $0x348] sm:$0xff]  }
  0x44   :  { %4093 = vmatpush3.bf16.msra.mxu1 %v4531_v7  ;;  %v4571_v7 = vld [vmem:[%s5789_s29 + $0x380] sm:$0xff]  }
  0x45   :  { %4094 = vmatprep.subr.bf16.mxu1 %v4534_v10  ;;  %v4574_v10 = vld [vmem:[%s5789_s29 + $0x3c8] sm:$0xff]  }
  0x46   :  { %4073 = vmatpush3.bf16.msra.mxu0 %v4533_v9  ;;  %v4573_v9 = vld [vmem:[%s5789_s29 + $0x308] sm:$0xff]  }
  0x47   :  { %4102 = vmatprep.subr.bf16.mxu0 %v4536_v18  ;;  %v4582_v18 = vld [vmem:[%s5789_s29 + $0x3d8] sm:$0xff]  }
  0x48   :  { %4095 = vmatpush3.bf16.msra.mxu1 %v4535_v14  ;;  %v4578_v14 = vld [vmem:[%s5789_s29 + $0x3d0] sm:$0xff]  }
  0x49   :  { %1350 = vmatmul.mubr.bf16.vlgmr.msra.gmra.mrb[4].mxu0 %v100_v17  ;;  %4124 = vmatprep.subr.bf16.mxu1 %v4538_v26  ;;  %v4581_v17 = vld [vmem:[%s5789_s29 + $0x318] sm:$0xff]   ;;  %v4590_v26 = vld [vmem:[%s5789_s29 + $0x3e8] sm:$0xff]  }
  0x4a   :  { %4103 = vmatpush3.bf16.msra.mxu0 %v4537_v22  ;;  %1431 = vmatprep.mubr.bf16.mxu0 %v105_v57  ;;  %v4586_v22 = vld [vmem:[%s5789_s29 + $0x3e0] sm:$0xff]   ;;  %v4605_v57 = vld [vmem:[%s5789_s29 + $0x428] sm:$0xff]  }
  0x4b   :  { %1391 = vmatmul.mubr.bf16.vlgmr.msra.gmra.mrb[4].mxu1 %v102_v25  ;;  %4104 = vmatprep.subr.bf16.mxu0 %v4540_v28  ;;  %v4589_v25 = vld [vmem:[%s5789_s29 + $0x328] sm:$0xff]   ;;  %v4592_v28 = vld [vmem:[%s5789_s29 + $0x370] sm:$0xff]  }
  0x4c   :  { %4125 = vmatpush3.bf16.msra.mxu1 %v4539_v27  ;;  %1472 = vmatprep.mubr.bf16.mxu1 %v107_v1  ;;  %v4591_v27 = vld [vmem:[%s5789_s29 + $0x3a8] sm:$0xff]  }
  0x4d   :  { %4126 = vmatprep.subr.bf16.mxu1 %v4542_v30  ;;  %v4594_v30 = vld [vmem:[%s5789_s29 + $0x3f0] sm:$0xff]  }
  0x4e   :  { %4105 = vmatpush3.bf16.msra.mxu0 %v4541_v29  ;;  %v4593_v29 = vld [vmem:[%s5789_s29 + $0x330] sm:$0xff]  }
  0x4f   :  { %4106 = vmatprep.subr.bf16.mxu0 %v4544_v32  ;;  %v4596_v32 = vld [vmem:[%s5789_s29 + $0x378] sm:$0xff]  }
  0x50   :  { %4127 = vmatpush3.bf16.msra.mxu1 %v4543_v31  ;;  %v4595_v31 = vld [vmem:[%s5789_s29 + $0x3b0] sm:$0xff]  }
  0x51   :  { %4128 = vmatprep.subr.bf16.mxu1 %v4546_v34  ;;  %v4598_v34 = vld [vmem:[%s5789_s29 + $0x3f8] sm:$0xff]  }
  0x52   :  { %4107 = vmatpush3.bf16.msra.mxu0 %v4545_v33  ;;  %v4597_v33 = vld [vmem:[%s5789_s29 + $0x338] sm:$0xff]  }
  0x53   :  { %4108 = vmatprep.subr.bf16.mxu0 %v4548_v36  ;;  %v91_v36 = vld [vmem:[%s5790_s22 + $0xf8] sm:$0xff] }
  0x54   :  { %4129 = vmatpush3.bf16.msra.mxu1 %v4547_v35  ;;  %v73_v35 = vld [vmem:[%s5790_s22 + $0x68] sm:$0xff] }
  0x55   :  { %4130 = vmatprep.subr.bf16.mxu1 %v4550_v38  ;;  %v4599_v38 = vld [vmem:[%s5789_s29 + $0x3b8] sm:$0xff]  }
  0x56   :  { %4109 = vmatpush3.bf16.msra.mxu0 %v4549_v37  ;;  %v109_v37 = vpack.c.bf16 %v91_v36, %v73_v35 }
  0x57   :  { %4110 = vmatprep.subr.bf16.mxu0 %v4552_v40  ;;  %v4704_v40 = vmov 0  }
  0x58   :  { %4131 = vmatpush3.bf16.msra.mxu1 %v4551_v39  ;;  %v72_v39 = vld [vmem:[%s5790_s22 + $0x60] sm:$0xff] }
  0x59   :  { %4132 = vmatprep.subr.bf16.mxu1 %v4554_v42  ;;  %v75_v42 = vld [vmem:[%s5790_s22 + $0x78] sm:$0xff] }
  0x5a   :  { %4111 = vmatpush3.bf16.msra.mxu0 %v4553_v41  ;;  %v90_v41 = vld [vmem:[%s5790_s22 + $0xf0] sm:$0xff] }
  0x5b   :  { %4112 = vmatprep.subr.bf16.mxu0 %v4556_v44  ;;  %v108_v44 = vpack.c.bf16 %v90_v41, %v72_v39 }
  0x5c   :  { %4133 = vmatpush3.bf16.msra.mxu1 %v4555_v43  ;;  %v93_v43 = vld [vmem:[%s5790_s22 + $0x108] sm:$0xff] }
  0x5d   :  { %4134 = vmatprep.subr.bf16.mxu1 %v4558_v46  ;;  %v4600_v46 = vld [vmem:[%s5789_s29 + $0x400] sm:$0xff]  }
  0x5e   :  { %4113 = vmatpush3.bf16.msra.mxu0 %v4557_v45  ;;  %v111_v45 = vpack.c.bf16 %v93_v43, %v75_v42 }
  0x5f   :  { %4114 = vmatprep.subr.bf16.mxu0 %v4560_v48  ;;  %v92_v48 = vld [vmem:[%s5790_s22 + $0x100] sm:$0xff] }
  0x60   :  { %4135 = vmatpush3.bf16.msra.mxu1 %v4559_v47  ;;  %v74_v47 = vld [vmem:[%s5790_s22 + $0x70] sm:$0xff] }
  0x61   :  { %4136 = vmatprep.subr.bf16.mxu1 %v4562_v50  ;;  %v4601_v50 = vld [vmem:[%s5789_s29 + $0x408] sm:$0xff]  }
  0x62   :  { %4115 = vmatpush3.bf16.msra.mxu0 %v4561_v49  ;;  %v110_v49 = vpack.c.bf16 %v92_v48, %v74_v47 }
  0x63   :  { %4116 = vmatprep.subr.bf16.mxu0 %v4564_v52  ;;  %v77_v52 = vld [vmem:[%s5790_s22 + $0x88] sm:$0xff] }
  0x64   :  { %4137 = vmatpush3.bf16.msra.mxu1 %v4563_v51  ;;  %v4602_v51 = vld [vmem:[%s5789_s29 + $0x410] sm:$0xff]  }
  0x65   :  { %4138 = vmatprep.subr.bf16.mxu1 %v4566_v54  ;;  %v95_v54 = vld [vmem:[%s5790_s22 + $0x118] sm:$0xff] }
  0x66   :  { %4117 = vmatpush3.bf16.msra.mxu0 %v4565_v53  ;;  %v4603_v53 = vld [vmem:[%s5789_s29 + $0x418] sm:$0xff]   ;;  %v113_v55 = vpack.c.bf16 %v95_v54, %v77_v52 }
  0x67   :  { %4146 = vmatprep.subr.bf16.mxu0 %v4568_v62  ;;  %v4608_v62 = vld [vmem:[%s5789_s29 + $0x440] sm:$0xff]  }
  0x68   :  { %4139 = vmatpush3.bf16.msra.mxu1 %v4567_v58  ;;  %v4606_v58 = vld [vmem:[%s5789_s29 + $0x430] sm:$0xff]   ;;  %s5791_s29 = sld [smem:[#allocation4_spill]] }
  0x69   :  { %1432 = vmatmul.mubr.bf16.vlgmr.msra.gmra.mrb[8].mxu0 %v104_v61  ;;  %4168 = vmatprep.subr.bf16.mxu1 %v4570_v6  ;;  %v1230_v61 = vsel %vm1228_vm1, 4294967295, %v4705_v60 }
  0x6a   :  { %4147 = vmatpush3.bf16.msra.mxu0 %v4569_v2  ;;  %1513 = vmatprep.mubr.bf16.mxu0 %v109_v37  ;;  %v1231_v0 = vsel %vm1229_vm2, %v1230_v61, 0  ;;  %v76_v2 = vld [vmem:[%s5790_s22 + $0x80] sm:$0xff] }
  0x6b   :  { %1473 = vmatmul.mubr.bf16.vlgmr.msra.gmra.mrb[8].mxu1 %v106_v5  ;;  %4148 = vmatprep.subr.bf16.mxu0 %v4572_v8  ;;  %v1233_v1 = vand.u32 %v4609_v63, %v1231_v0  ;;  %v112_v4 = vpack.c.bf16 %v94_v3, %v76_v2 }
  0x6c   :  { %4169 = vmatpush3.bf16.msra.mxu1 %v4571_v7  ;;  %1554 = vmatprep.mubr.bf16.mxu1 %v111_v45 }
  0x6d   :  { %4170 = vmatprep.subr.bf16.mxu1 %v4574_v10 }
  0x6e   :  { %4149 = vmatpush3.bf16.msra.mxu0 %v4573_v9  ;;  %v3788_v6 = vld [vmem:[%s5791_s29] ss:$0 sm:$0xff] }
  0x6f   :  { %4150 = vmatprep.subr.bf16.mxu0 %v4576_v12 }
  0x70   :  { %4171 = vmatpush3.bf16.msra.mxu1 %v4575_v11 }
  0x71   :  { %4172 = vmatprep.subr.bf16.mxu1 %v4578_v14 }
  0x72   :  { %4151 = vmatpush3.bf16.msra.mxu0 %v4577_v13 }
  0x73   :  { %4152 = vmatprep.subr.bf16.mxu0 %v4580_v16 }
  0x74   :  { %4173 = vmatpush3.bf16.msra.mxu1 %v4579_v15 }
  0x75   :  { %4174 = vmatprep.subr.bf16.mxu1 %v4582_v18 }
  0x76   :  { %4153 = vmatpush3.bf16.msra.mxu0 %v4581_v17 }
  0x77   :  { %4154 = vmatprep.subr.bf16.mxu0 %v4584_v20 }
  0x78   :  { %4175 = vmatpush3.bf16.msra.mxu1 %v4583_v19 }
  0x79   :  { %4176 = vmatprep.subr.bf16.mxu1 %v4586_v22  ;;  %v4610_v22 = vld [vmem:[%s5768_s4] sm:$0xff]  }
  0x7a   :  { %4155 = vmatpush3.bf16.msra.mxu0 %v4585_v21 }
  0x7b   :  { %4156 = vmatprep.subr.bf16.mxu0 %v4588_v24  ;;  %v4611_v24 = vld [vmem:[%s5768_s4 + $0x8] sm:$0xff]  }
  0x7c   :  { %4177 = vmatpush3.bf16.msra.mxu1 %v4587_v23  ;;  %v4706_v23 = vmov 0.0  }
  0x7d   :  { %4178 = vmatprep.subr.bf16.mxu1 %v4590_v26 }
  0x7e   :  { %4157 = vmatpush3.bf16.msra.mxu0 %v4589_v25 }
  0x7f   :  { %4158 = vmatprep.subr.bf16.mxu0 %v4592_v28 }
  0x80   :  { %4179 = vmatpush3.bf16.msra.mxu1 %v4591_v27 }
  0x81   :  { %4180 = vmatprep.subr.bf16.mxu1 %v4594_v30 }
  0x82   :  { %4159 = vmatpush3.bf16.msra.mxu0 %v4593_v29 }
  0x83   :  { %4160 = vmatprep.subr.bf16.mxu0 %v4596_v32 }
  0x84   :  { %4181 = vmatpush3.bf16.msra.mxu1 %v4595_v31 }
  0x85   :  { %4182 = vmatprep.subr.bf16.mxu1 %v4598_v34 }
  0x86   :  { %4161 = vmatpush3.bf16.msra.mxu0 %v4597_v33 }
  0x87   :  { %1563 = vmatprep.subr.bf16.mxu0 %v4704_v40 }
  0x88   :  { %4183 = vmatpush3.bf16.msra.mxu1 %v4599_v38 }
  0x89   :  { %1514 = vmatmul.mubr.bf16.vlgmr.msra.gmra.mrb[12].mxu0 %v108_v44  ;;  %4259 = vmatprep.subr.bf16.mxu1 %v4706_v23 }
  0x8a   :  { %1564 = vmatpush1.bf16.msra.mxu0 %v4600_v46  ;;  %3927 = vmatprep.mubr.msk.bf16.mxu0 %vm1224_vm0, %v113_v55 }
  0x8b   :  { %1555 = vmatmul.mubr.bf16.vlgmr.msra.gmra.mrb[12].mxu1 %v110_v49  ;;  %1565 = vmatprep.subr.bf16.mxu0 %v4704_v40 }
  0x8c   :  { %4260 = vmatpush3.bf16.msra.mxu1 %v4610_v22  ;;  %4263 = vmatprep.mubr.msk.bf16.mxu1 %vm4707_vm3, %v4706_v23 }
  0x8d   :  { %4261 = vmatprep.subr.bf16.mxu1 %v4706_v23 }
  0x8e   :  { %1566 = vmatpush1.bf16.msra.mxu0 %v4601_v50 }
  0x8f   :  { %1567 = vmatprep.subr.bf16.mxu0 %v4704_v40 }
  0x90   :  { %4262 = vmatpush3.bf16.msra.mxu1 %v4611_v24 }
  0x91   :  { %4267 = vmatprep.subr.bf16.mxu1 %v4706_v23 }
  0x92   :  { %1568 = vmatpush1.bf16.msra.mxu0 %v4602_v51 }
  0x93   :  { %1569 = vmatprep.subr.bf16.mxu0 %v4704_v40 }
  0x96   :  { %1570 = vmatpush1.bf16.msra.mxu0 %v4603_v53 }
  0x97   :  { %1571 = vmatprep.subr.bf16.mxu0 %v4704_v40 }
  0x9a   :  { %1572 = vmatpush1.bf16.msra.mxu0 %v4604_v56 }
  0x9b   :  { %1573 = vmatprep.subr.bf16.mxu0 %v4704_v40 }
  0x9e   :  { %1574 = vmatpush1.bf16.msra.mxu0 %v4605_v57 }
  0x9f   :  { %1575 = vmatprep.subr.bf16.mxu0 %v4704_v40 }
  0xa2   :  { %1576 = vmatpush1.bf16.msra.mxu0 %v4606_v58 }
  0xa3   :  { %1577 = vmatprep.subr.bf16.mxu0 %v4704_v40 }
  0xa6   :  { %1578 = vmatpush1.bf16.msra.mxu0 %v4607_v59 }
  0xa7   :  { %1579 = vmatprep.subr.bf16.mxu0 %v4704_v40 }
  0xaa   :  { %1580 = vmatpush1.bf16.msra.mxu0 %v4608_v62 }
  0xab   :  { %1581 = vmatprep.subr.bf16.mxu0 %v4704_v40 }
  0xae   :  { %1582 = vmatpush1.bf16.msra.mxu0 %v1233_v1 }
  0xaf   :  { %4291 = vmatprep.subr.bf16.mxu0 %v4706_v23 }
  0xb1   :  { %1596 = vmatmul.mubr.bf16.vlgmr.msra.gmra.mrb[16].mxu0 %v112_v4 }
  0xb2   :  { %4293 = vmatprep.mubr.msk.bf16.mxu0 %vm4707_vm3, %v4706_v23 }
  0xfc   :  { %v4030_v5 = vpop.f32.mrb[0].mxu0 }
  0xfd   :  { %v4031_v7 = vpop.f32.mrb[1].mxu0 }
  0xfe   :  { %v4032_v8 = vadd.f32 %v4031_v7, %v4030_v5  ;;  %v4033_v9 = vpop.f32.mrb[2].mxu0  ;;  %v4052_v10 = vpop.f32.mrb[0].mxu1 }
  0xff   :  { %v4034_v11 = vpop.f32.mrb[3].mxu0  ;;  %v4053_v14 = vpop.f32.mrb[1].mxu1 }
 0x100   :  { %v1270_v12 = vadd.f32 %v4032_v8, %v3788_v6  ;;  %v4035_v13 = vadd.f32 %v4034_v11, %v4033_v9  ;;  %v4054_v15 = vadd.f32 %v4053_v14, %v4052_v10  ;;  %v4055_v16 = vpop.f32.mrb[2].mxu1  ;;  %v1605_v14 = vld [vmem:[%s5769_s3 + $0x8] sm:$0xff] }
 0x101   :  { %v4056_v18 = vpop.f32.mrb[3].mxu1 }
 0x102   :  { %v1273_v17 = vadd.f32 %v4035_v13, %v3788_v6  ;;  %v1311_v19 = vadd.f32 %v4054_v15, %v1270_v12  ;;  %v4057_v20 = vadd.f32 %v4056_v18, %v4055_v16  ;;  %v1604_v12 = vld [vmem:[%s5769_s3] sm:$0xff]  ;;  %s4708_s3 = smov 96  }
 0x104   :  { %v1314_v21 = vadd.f32 %v4057_v20, %v1273_v17  ;;  %v3928_v20 = vld [vmem:[%s5770_s5] ss:$0 sm:$0xff] }
 0x11c   :  { %v4074_v25 = vpop.f32.mrb[4].mxu0 }
 0x11d   :  { %v4075_v26 = vpop.f32.mrb[5].mxu0 }
 0x11e   :  { %v4076_v27 = vadd.f32 %v4075_v26, %v4074_v25  ;;  %v4077_v28 = vpop.f32.mrb[6].mxu0  ;;  %v4096_v31 = vpop.f32.mrb[4].mxu1 }
 0x11f   :  { %v4078_v29 = vpop.f32.mrb[7].mxu0  ;;  %v4097_v33 = vpop.f32.mrb[5].mxu1 }
 0x120   :  { %v1352_v30 = vadd.f32 %v4076_v27, %v1311_v19  ;;  %v4079_v32 = vadd.f32 %v4078_v29, %v4077_v28  ;;  %v4098_v35 = vadd.f32 %v4097_v33, %v4096_v31  ;;  %v4099_v36 = vpop.f32.mrb[6].mxu1 }
 0x121   :  { %v4100_v37 = vpop.f32.mrb[7].mxu1 }
 0x122   :  { %v1355_v34 = vadd.f32 %v4079_v32, %v1314_v21  ;;  %v1393_v38 = vadd.f32 %v4098_v35, %v1352_v30  ;;  %v4101_v39 = vadd.f32 %v4100_v37, %v4099_v36  ;;  %v1608_v35 = vlaneseq }
 0x124   :  { %v1396_v40 = vadd.f32 %v4101_v39, %v1355_v34  ;;  %v1609_v36 = vshrl.u32 %v1608_v35, 7  ;;  %v1614_v37 = vand.u32 127, %v1608_v35 }
 0x126   :  { %v1611_v39 = vcvt.s32.f32 %v1609_v36 }
 0x13c   :  { %v4118_v41 = vpop.f32.mrb[8].mxu0 }
 0x13d   :  { %v4119_v42 = vpop.f32.mrb[9].mxu0 }
 0x13e   :  { %v4120_v43 = vadd.f32 %v4119_v42, %v4118_v41  ;;  %v4121_v44 = vpop.f32.mrb[10].mxu0  ;;  %v4140_v45 = vpop.f32.mrb[8].mxu1  ;;  %v1616_v42 = vadd.f32 0.5, %v1611_v39 }
 0x13f   :  { %v4122_v46 = vpop.f32.mrb[11].mxu0  ;;  %v4141_v49 = vpop.f32.mrb[9].mxu1 }
 0x140   :  { %v1434_v47 = vadd.f32 %v4120_v43, %v1393_v38  ;;  %v4123_v48 = vadd.f32 %v4122_v46, %v4121_v44  ;;  %v4142_v50 = vadd.f32 %v4141_v49, %v4140_v45  ;;  %v4143_v51 = vpop.f32.mrb[10].mxu1  ;;  %v1610_v38 = vadd.s32 8, %v1609_v36 }
 0x141   :  { %v4144_v53 = vpop.f32.mrb[11].mxu1  ;;  %v1618_v45 = vmul.f32 0.5, %v1616_v42 }
 0x142   :  { %v1437_v52 = vadd.f32 %v4123_v48, %v1396_v40  ;;  %v1475_v54 = vadd.f32 %v4142_v50, %v1434_v47  ;;  %v4145_v55 = vadd.f32 %v4144_v53, %v4143_v51  ;;  %v1615_v40 = vcvt.s32.f32 %v1614_v37 }
 0x143   :  { %v1612_v41 = vcvt.s32.f32 %v1610_v38  ;;  %v1620_v48 = vfloor.f32 %v1618_v45 }
 0x144   :  { %v1478_v56 = vadd.f32 %v4145_v55, %v1437_v52  ;;  %v1622_v43 = vadd.f32 0.5, %v1615_v40 }
 0x145   :  { %v1617_v44 = vadd.f32 0.5, %v1612_v41  ;;  %v1625_v51 = vmul.f32 2.0, %v1620_v48 }
 0x146   :  { %v1623_v46 = vmul.f32 0.5, %v1622_v43 }
 0x147   :  { %v1619_v47 = vmul.f32 0.5, %v1617_v44 }
 0x148   :  { %v1624_v49 = vfloor.f32 %v1623_v46 }
 0x149   :  { %v1621_v50 = vfloor.f32 %v1619_v47 }
 0x14a   :  { %v1629_v52 = vmul.f32 2.0, %v1624_v49  ;;  %vm1633_vm8 = vcmp.le.f32.partialorder %v1624_v49, %v1620_v48 }
 0x14b   :  { %v1626_v53 = vmul.f32 2.0, %v1621_v50  ;;  %vm1634_vm10 = vcmp.le.f32.partialorder %v1624_v49, %v1621_v50 }
 0x14c   :  { %v1630_v55 = vsub.f32 %v1615_v40, %v1629_v52 }
 0x15c   :  { %v4162_v57 = vpop.f32.mrb[12].mxu0 }
 0x15d   :  { %v4163_v58 = vpop.f32.mrb[13].mxu0 }
 0x15e   :  { %v4164_v59 = vadd.f32 %v4163_v58, %v4162_v57  ;;  %v4165_v60 = vpop.f32.mrb[14].mxu0  ;;  %v4184_v61 = vpop.f32.mrb[12].mxu1  ;;  %v4709_v57 = vmov -1e+30  }
 0x15f   :  { %v4166_v62 = vpop.f32.mrb[15].mxu0  ;;  %v4185_v63 = vpop.f32.mrb[13].mxu1 }
 0x160   :  { %v1516_v0 = vadd.f32 %v4164_v59, %v1475_v54  ;;  %v4167_v1 = vadd.f32 %v4166_v62, %v4165_v60  ;;  %v4186_v2 = vadd.f32 %v4185_v63, %v4184_v61  ;;  %v4187_v3 = vpop.f32.mrb[14].mxu1  ;;  %v1627_v54 = vsub.f32 %v1611_v39, %v1625_v51 }
 0x161   :  { %v4188_v4 = vpop.f32.mrb[15].mxu1 }
 0x162   :  { %v1519_v5 = vadd.f32 %v4167_v1, %v1478_v56  ;;  %v4189_v6 = vadd.f32 %v4188_v4, %v4187_v3  ;;  %v1557_v7 = vadd.f32 %v4186_v2, %v1516_v0  ;;  %v1628_v56 = vsub.f32 %v1612_v41, %v1626_v53 }
 0x163   :  { %vm1631_vm7 = vcmp.eq.f32.partialorder %v1627_v54, %v1630_v55 }
 0x164   :  { %v1560_v8 = vadd.f32 %v4189_v6, %v1519_v5  ;;  %vm1632_vm9 = vcmp.eq.f32.partialorder %v1628_v56, %v1630_v55  ;;  %vm1635_vm11 = vmand %vm1631_vm7, %vm1633_vm8 }
 0x165   :  { %vm1636_vm12 = vmand %vm1632_vm9, %vm1634_vm10  ;;  %v5382_v58 = vsel %vm1635_vm11, 0.0, %v4709_v57 }
 0x166   :  { %v5384_v60 = vsel %vm1636_vm12, 0.0, %v4709_v57 }
 0x184   :  { %v1597_v9 = vpop.f32.mrb[16].mxu0 }
 0x185   :  { %v1598_v10 = vadd.f32 %v1597_v9, %v1557_v7  ;;  %v1599_v11 = vpop.f32.mrb[17].mxu0 }
 0x186   :  { %v1600_v13 = vpop.f32.mrb[18].mxu0 }
 0x187   :  { %v1601_v15 = vadd.f32 %v1600_v13, %v1560_v8  ;;  %v1602_v16 = vpop.f32.mrb[19].mxu0  ;;  %v5357_v17 = vadd.f32 %v1604_v12, %v1598_v10 }
 0x189   :  { %v5359_v18 = vadd.f32 %v1605_v14, %v1601_v15 }
 0x18b   :  { %v1649_v19 = vpack.c.bf16 %v5359_v18, %v5357_v17 }
 0x18d   :  { %4264 = vmatmul.mubr.msk.bf16.vlgmr.msra.gmra.mrb[16].mxu1 %vm1668_vm4, %v1649_v19 }
 0x18e   :  { %4269 = vmatprep.mubr.msk.bf16.mxu1 %vm4707_vm3, %v4706_v23 }
 0x260   :  { %v1706_v21 = vpop.f32.mrb[16].mxu1 }
 0x261   :  { %v1707_v22 = vadd.f32 %v3928_v20, %v1706_v21  ;;  %v4265_v24 = vpop.f32.mrb[17].mxu1 }
 0x262   :  { %v1709_v25 = vpop.f32.mrb[18].mxu1 }
 0x263   :  { %v1710_v26 = vadd.f32 %v3928_v20, %v1709_v25  ;;  %1716 = vrot.lane.b32.xlu0 %v1707_v22, %s4708_s3  ;;  %v4266_v27 = vpop.f32.mrb[19].mxu1 }
 0x265   :  { %v5370_v28 = vpack.c.bf16 %v1710_v26, %v1707_v22 }
 0x267   :  { %1718 = vrot.lane.b32.xlu0 %v1710_v26, %s4708_s3 }
 0x2d5   :  { %v1717_v29 = vpop.permute.xlu0 %1716 }
 0x2d6   :  { %1722 = vxpose.xlu1.b32.start [1/2] (short) (narrow) %v1717_v29, 32 }
 0x2d9   :  { %v1719_v30 = vpop.permute.xlu0 %1718 }
 0x2da   :  { %1723 = vxpose.xlu1.b32.end [2/2] (short) (narrow) %v1719_v30, 32 }
 0x356   :  { %v1738_v31 = vpop.trf.xlu1 }
 0x35a   :  { %v1739_v32 = vpop.trf.xlu1 }
 0x35b   :  { %v5373_v33 = vpack.c.bf16 %v1739_v32, %v1738_v31 }
 0x35d   :  { %v1762_v34 = vsel %vm1760_vm5, %v5373_v33, 0  ;;  %v1881_v24 = vrot.slane %v5373_v33, 4 }
 0x35e   :  { %4268 = vmatpush3.bf16.msra.mxu1 %v1762_v34  ;;  %v5392_v4 = vpop.trf.xlu1 }
 0x35f   :  { %4273 = vmatprep.subr.bf16.mxu1 %v4706_v23  ;;  %v1886_v29 = vsel %vm1760_vm5, %v1881_v24, 0 }
 0x361   :  { %4270 = vmatmul.mubr.msk.bf16.vlgmr.msra.gmra.mrb[20].mxu1 %vm1756_vm6, %v5370_v28 }
 0x362   :  { %4275 = vmatprep.mubr.msk.bf16.mxu1 %vm4707_vm3, %v4706_v23  ;;  %v5394_v5 = vpop.trf.xlu1 }
 0x434   :  { %v1798_v59 = vpop.f32.mrb[20].mxu1 }
 0x435   :  { %v1799_v61 = vadd.f32 %v1798_v59, %v5382_v58  ;;  %v4271_v62 = vpop.f32.mrb[21].mxu1 }
 0x436   :  { %v1801_v63 = vpop.f32.mrb[22].mxu1 }
 0x437   :  { %v1802_v0 = vadd.f32 %v1801_v63, %v5384_v60  ;;  %v4272_v1 = vpop.f32.mrb[23].mxu1  ;;  %v1806_v2 = vsel %vm1805_vm13, %v1799_v61, -inf }
 0x438   :  { %1807 = vmax.xlane.f32.xlu0 %v1806_v2  ;;  %v1645_v2 = vld [vmem:[%s5771_s6 + $0x4] sm:$0xf] }
 0x439   :  { %v1809_v3 = vsel %vm1805_vm13, %v1802_v0, -inf }
 0x43a   :  { %1810 = vmax.xlane.f32.xlu1 %v1809_v3  ;;  %v2004_v3 = vsel %vm1760_vm5, %v1645_v2, 0 }
 0x43b   :  { %4292 = vmatpush3.bf16.msra.mxu0 %v2004_v3 }
 0x43c   :  { %4303 = vmatprep.subr.bf16.mxu0 %v4706_v23 }
 0x44b   :  { %1878 = vrot.lane.b32.xlu1 %v5370_v28, %s4710_s19 }
 0x4c5   :  { %v1808_v6 = vpop.xlane.xlu0 %1807 }
 0x4c6   :  { %v1812_v7 = vsub.f32 %v1799_v61, %v1808_v6  ;;  %v1644_v61 = vld [vmem:[%s5771_s6] sm:$0xf] }
 0x4c7   :  { %v1811_v8 = vpop.xlane.xlu1 %1810  ;;  %v2051_v1 = vsel %vm1760_vm5, %v1644_v61, 0 }
 0x4c8   :  { %v1814_v9 = vmul.f32 1.442695, %v1812_v7  ;;  %v1813_v10 = vsub.f32 %v1802_v0, %v1811_v8  ;;  %v5439_v7 = vpack.c.bf16 %v5394_v5, %v5392_v4 }
 0x4ca   :  { %4624 = vpow2.f32 %v1814_v9  ;;  %v1816_v11 = vmul.f32 1.442695, %v1813_v10 }
 0x4cb   :  { %v1879_v30 = vpop.permute.xlu1 %1878 }
 0x4cc   :  { %4626 = vpow2.f32 %v1816_v11 }
 0x4d4   :  { %v4625_v12 = vpop.eup %4624 }
 0x4d5   :  { %v1818_v13 = vsel %vm1805_vm13, %v4625_v12, 0.0 }
 0x4d6   :  { %v4627_v14 = vpop.eup %4626  ;;  %1819 = vadd.xlane.f32.xlu0 %v1818_v13 }
 0x4d7   :  { %v1821_v15 = vsel %vm1805_vm13, %v4627_v14, 0.0 }
 0x4da   :  { %1822 = vadd.xlane.f32.xlu0 %v1821_v15 }
 0x4f0   :  { %1830 = vrot.lane.b32.xlu0 %v5370_v28, %s4711_s0 }
 0x563   :  { %v1820_v16 = vpop.xlane.xlu0 %1819 }
 0x564   :  { %4628 = vrcp.f32 %v1820_v16 }
 0x567   :  { %v1823_v19 = vpop.xlane.xlu0 %1822 }
 0x568   :  { %4630 = vrcp.f32 %v1823_v19 }
 0x56b   :  { %v1831_v20 = vpop.permute.xlu0 %1830 }
 0x56c   :  { %4274 = vmatpush3.bf16.msra.mxu1 %v1831_v20 }
 0x56d   :  { %4279 = vmatprep.subr.bf16.mxu1 %v4706_v23 }
 0x56e   :  { %v4629_v21 = vpop.eup %4628 }
 0x56f   :  { %v1826_v25 = vmul.f32 %v4629_v21, %v4625_v12  ;;  %v2100_v12 = vsel %vm1760_vm5, %v5439_v7, 0 }
 0x572   :  { %v4631_v22 = vpop.eup %4630 }
 0x573   :  { %v1827_v26 = vmul.f32 %v4631_v22, %v4627_v14 }
 0x575   :  { %v1828_v27 = vpack.c.bf16 %v1827_v26, %v1826_v25 }
 0x577   :  { %4276 = vmatmul.mubr.msk.bf16.vlgmr.msra.gmra.mrb[24].mxu1 %vm1805_vm13, %v1828_v27 }
 0x578   :  { %4280 = vmatpush3.bf16.msra.mxu1 %v1886_v29  ;;  %4281 = vmatprep.mubr.msk.bf16.mxu1 %vm4707_vm3, %v4706_v23 }
 0x579   :  { %4285 = vmatprep.subr.bf16.mxu1 %v4706_v23 }
 0x57f   :  { %4282 = vmatmul.mubr.msk.bf16.vlgmr.msra.gmra.mrb[28].mxu1 %vm1756_vm6, %v1879_v30 }
 0x580   :  { %4287 = vmatprep.mubr.msk.bf16.mxu1 %vm4707_vm3, %v4706_v23 }
 0x64a   :  { %v1870_v31 = vpop.f32.mrb[24].mxu1 }
 0x64b   :  { %v4277_v32 = vpop.f32.mrb[25].mxu1 }
 0x64c   :  { %v1873_v33 = vpop.f32.mrb[26].mxu1 }
 0x64d   :  { %v1877_v34 = vpack.c.bf16 %v1873_v33, %v1870_v31  ;;  %v4278_v35 = vpop.f32.mrb[27].mxu1 }
 0x652   :  { %v1922_v36 = vpop.f32.mrb[28].mxu1 }
 0x653   :  { %v1923_v37 = vadd.f32 %v1922_v36, %v5382_v58  ;;  %v4283_v38 = vpop.f32.mrb[29].mxu1 }
 0x654   :  { %v1925_v39 = vpop.f32.mrb[30].mxu1 }
 0x655   :  { %v1926_v40 = vadd.f32 %v1925_v39, %v5384_v60  ;;  %v4284_v41 = vpop.f32.mrb[31].mxu1  ;;  %v1929_v42 = vsel %vm1805_vm13, %v1923_v37, -inf }
 0x656   :  { %1930 = vmax.xlane.f32.xlu0 %v1929_v42 }
 0x657   :  { %v1932_v43 = vsel %vm1805_vm13, %v1926_v40, -inf }
 0x658   :  { %1933 = vmax.xlane.f32.xlu1 %v1932_v43 }
 0x669   :  { %2094 = vrot.lane.b32.xlu1 %v5370_v28, %s4712_s20 }
 0x6e3   :  { %v1931_v44 = vpop.xlane.xlu0 %1930 }
 0x6e4   :  { %v1935_v45 = vsub.f32 %v1923_v37, %v1931_v44 }
 0x6e5   :  { %v1934_v46 = vpop.xlane.xlu1 %1933 }
 0x6e6   :  { %v1937_v47 = vmul.f32 1.442695, %v1935_v45  ;;  %v1936_v48 = vsub.f32 %v1926_v40, %v1934_v46 }
 0x6e8   :  { %4632 = vpow2.f32 %v1937_v47  ;;  %v1939_v49 = vmul.f32 1.442695, %v1936_v48 }
 0x6e9   :  { %v2095_v5 = vpop.permute.xlu1 %2094 }
 0x6ea   :  { %4634 = vpow2.f32 %v1939_v49  ;;  %v2266_v49 = vrot.slane %v5439_v7, 4 }
 0x6f2   :  { %v4633_v50 = vpop.eup %4632 }
 0x6f3   :  { %v1941_v51 = vsel %vm1805_vm13, %v4633_v50, 0.0 }
 0x6f4   :  { %v4635_v52 = vpop.eup %4634  ;;  %1942 = vadd.xlane.f32.xlu0 %v1941_v51 }
 0x6f5   :  { %v1944_v53 = vsel %vm1805_vm13, %v4635_v52, 0.0 }
 0x6f8   :  { %1945 = vadd.xlane.f32.xlu0 %v1944_v53  ;;  %v2271_v53 = vsel %vm1760_vm5, %v2266_v49, 0 }
 0x70e   :  { %1952 = vrot.lane.b32.xlu0 %v5370_v28, %s4713_s21 }
 0x781   :  { %v1943_v54 = vpop.xlane.xlu0 %1942 }
 0x782   :  { %4636 = vrcp.f32 %v1943_v54 }
 0x785   :  { %v1946_v55 = vpop.xlane.xlu0 %1945 }
 0x786   :  { %4638 = vrcp.f32 %v1946_v55  ;;  %v1646_v55 = vld [vmem:[%s5771_s6 + $0x8] sm:$0xf] }
 0x789   :  { %v1953_v56 = vpop.permute.xlu0 %1952 }
 0x78a   :  { %4286 = vmatpush3.bf16.msra.mxu1 %v1953_v56  ;;  %v2218_v56 = vsel %vm1760_vm5, %v1646_v55, 0 }
 0x78b   :  { %4297 = vmatprep.subr.bf16.mxu1 %v4706_v23 }
 0x78c   :  { %v4637_v57 = vpop.eup %4636 }
 0x78d   :  { %v1949_v62 = vmul.f32 %v4637_v57, %v4633_v50 }
 0x790   :  { %v4639_v59 = vpop.eup %4638 }
 0x791   :  { %v1950_v63 = vmul.f32 %v4639_v59, %v4635_v52 }
 0x793   :  { %v1951_v0 = vpack.c.bf16 %v1950_v63, %v1949_v62 }
 0x795   :  { %4288 = vmatmul.mubr.msk.bf16.vlgmr.msra.gmra.mrb[32].mxu1 %vm1805_vm13, %v1951_v0 }
 0x796   :  { %4298 = vmatpush3.bf16.msra.mxu1 %v2051_v1  ;;  %4299 = vmatprep.mubr.msk.bf16.mxu1 %vm4707_vm3, %v4706_v23 }
 0x797   :  { %4309 = vmatprep.subr.bf16.mxu1 %v4706_v23 }
 0x79d   :  { %4300 = vmatmul.mubr.msk.bf16.vlgmr.msra.gmra.mrb[36].mxu1 %vm1756_vm6, %v1877_v34 }
 0x79e   :  { %4311 = vmatprep.mubr.msk.bf16.mxu1 %vm4707_vm3, %v4706_v23 }
 0x868   :  { %v1992_v6 = vpop.f32.mrb[32].mxu1 }
 0x869   :  { %v4289_v8 = vpop.f32.mrb[33].mxu1 }
 0x86a   :  { %v1995_v9 = vpop.f32.mrb[34].mxu1 }
 0x86b   :  { %v1999_v10 = vpack.c.bf16 %v1995_v9, %v1992_v6  ;;  %v4290_v11 = vpop.f32.mrb[35].mxu1 }
 0x86d   :  { %4294 = vmatmul.mubr.msk.bf16.vlgmr.msra.gmra.mrb[20].mxu0 %vm1756_vm6, %v1999_v10 }
 0x86e   :  { %4304 = vmatpush3.bf16.msra.mxu0 %v2100_v12  ;;  %4305 = vmatprep.mubr.msk.bf16.mxu0 %vm4707_vm3, %v4706_v23 }
 0x86f   :  { %4315 = vmatprep.subr.bf16.mxu0 %v4706_v23 }
 0x870   :  { %v2087_v13 = vpop.f32.mrb[36].mxu1 }
 0x871   :  { %v4301_v14 = vpop.f32.mrb[37].mxu1 }
 0x872   :  { %v2090_v15 = vpop.f32.mrb[38].mxu1 }
 0x873   :  { %v4302_v4 = vpop.f32.mrb[39].mxu1 }
 0x875   :  { %4306 = vmatmul.mubr.msk.bf16.vlgmr.msra.gmra.mrb[24].mxu0 %vm1756_vm6, %v2095_v5 }
 0x876   :  { %4317 = vmatprep.mubr.msk.bf16.mxu0 %vm4707_vm3, %v4706_v23  ;;  %4316 = vmatpush3.bf16.msra.mxu0 %v2218_v56 }
 0x877   :  { %4327 = vmatprep.subr.bf16.mxu0 %v4706_v23 }
 0x940   :  { %v2040_v16 = vpop.f32.mrb[20].mxu0 }
 0x941   :  { %v5450_v19 = vadd.f32 %v2087_v13, %v2040_v16  ;;  %v4295_v20 = vpop.f32.mrb[21].mxu0 }
 0x942   :  { %v2043_v21 = vpop.f32.mrb[22].mxu0 }
 0x943   :  { %v5452_v22 = vadd.f32 %v2090_v15, %v2043_v21  ;;  %v4296_v24 = vpop.f32.mrb[23].mxu0 }
 0x948   :  { %v2136_v25 = vpop.f32.mrb[24].mxu0 }
 0x949   :  { %v2137_v26 = vadd.f32 %v2136_v25, %v5382_v58  ;;  %v4307_v27 = vpop.f32.mrb[25].mxu0 }
 0x94a   :  { %v2139_v29 = vpop.f32.mrb[26].mxu0 }
 0x94b   :  { %v2140_v30 = vadd.f32 %v2139_v29, %v5384_v60  ;;  %v4308_v31 = vpop.f32.mrb[27].mxu0  ;;  %v2143_v32 = vsel %vm1805_vm13, %v2137_v26, -inf }
 0x94c   :  { %2144 = vmax.xlane.f32.xlu1 %v2143_v32 }
 0x94d   :  { %v2146_v33 = vsel %vm1805_vm13, %v2140_v30, -inf }
 0x94e   :  { %2147 = vmax.xlane.f32.xlu0 %v2146_v33 }
 0x9d9   :  { %v2145_v34 = vpop.xlane.xlu1 %2144 }
 0x9da   :  { %v2149_v35 = vsub.f32 %v2137_v26, %v2145_v34 }
 0x9db   :  { %v2148_v36 = vpop.xlane.xlu0 %2147 }
 0x9dc   :  { %v2151_v37 = vmul.f32 1.442695, %v2149_v35  ;;  %v2150_v38 = vsub.f32 %v2140_v30, %v2148_v36 }
 0x9de   :  { %4640 = vpow2.f32 %v2151_v37  ;;  %v2153_v39 = vmul.f32 1.442695, %v2150_v38 }
 0x9e0   :  { %4642 = vpow2.f32 %v2153_v39 }
 0x9e8   :  { %v4641_v40 = vpop.eup %4640 }
 0x9e9   :  { %v2155_v41 = vsel %vm1805_vm13, %v4641_v40, 0.0 }
 0x9ea   :  { %v4643_v42 = vpop.eup %4642  ;;  %2156 = vadd.xlane.f32.xlu0 %v2155_v41 }
 0x9eb   :  { %v2158_v43 = vsel %vm1805_vm13, %v4643_v42, 0.0 }
 0x9ec   :  { %2159 = vadd.xlane.f32.xlu1 %v2158_v43 }
 0x9fd   :  { %2263 = vrot.lane.b32.xlu1 %v5370_v28, %s4714_s24 }
 0xa00   :  { %2166 = vrot.lane.b32.xlu0 %v5370_v28, %s4715_s25 }
 0xa77   :  { %v2157_v44 = vpop.xlane.xlu0 %2156 }
 0xa78   :  { %4644 = vrcp.f32 %v2157_v44 }
 0xa79   :  { %v2160_v45 = vpop.xlane.xlu1 %2159 }
 0xa7a   :  { %4646 = vrcp.f32 %v2160_v45 }
 0xa7b   :  { %v2167_v46 = vpop.permute.xlu0 %2166 }
 0xa7c   :  { %4310 = vmatpush3.bf16.msra.mxu1 %v2167_v46 }
 0xa7d   :  { %4321 = vmatprep.subr.bf16.mxu1 %v4706_v23  ;;  %v2264_v54 = vpop.permute.xlu1 %2263 }
 0xa82   :  { %v4645_v47 = vpop.eup %4644 }
 0xa83   :  { %v2163_v50 = vmul.f32 %v4645_v47, %v4641_v40 }
 0xa84   :  { %v4647_v48 = vpop.eup %4646 }
 0xa85   :  { %v2164_v51 = vmul.f32 %v4647_v48, %v4643_v42  ;;  %v3944_v42 = vld [vmem:[%s5772_s7] ss:$0 sm:$0xff] }
 0xa87   :  { %v2165_v52 = vpack.c.bf16 %v2164_v51, %v2163_v50 }
 0xa89   :  { %4312 = vmatmul.mubr.msk.bf16.vlgmr.msra.gmra.mrb[40].mxu1 %vm1805_vm13, %v2165_v52 }
 0xa8a   :  { %4322 = vmatpush3.bf16.msra.mxu1 %v2271_v53  ;;  %4323 = vmatprep.mubr.msk.bf16.mxu1 %vm4707_vm3, %v4706_v23 }
 0xa8b   :  { %4333 = vmatprep.subr.bf16.mxu1 %v4706_v23 }
 0xa91   :  { %4324 = vmatmul.mubr.msk.bf16.vlgmr.msra.gmra.mrb[44].mxu1 %vm1756_vm6, %v2264_v54 }
 0xa92   :  { %4335 = vmatprep.mubr.msk.bf16.mxu1 %vm4707_vm3, %v4706_v23 }
 0xb5c   :  { %v2206_v57 = vpop.f32.mrb[40].mxu1 }
 0xb5d   :  { %v4313_v59 = vpop.f32.mrb[41].mxu1 }
 0xb5e   :  { %v2209_v61 = vpop.f32.mrb[42].mxu1 }
 0xb5f   :  { %v2213_v62 = vpack.c.bf16 %v2209_v61, %v2206_v57  ;;  %v4314_v63 = vpop.f32.mrb[43].mxu1 }
 0xb61   :  { %4318 = vmatmul.mubr.msk.bf16.vlgmr.msra.gmra.mrb[28].mxu0 %vm1756_vm6, %v2213_v62 }
 0xb62   :  { %4329 = vmatprep.mubr.msk.bf16.mxu0 %vm4707_vm3, %v4706_v23 }
 0xb64   :  { %v2307_v0 = vpop.f32.mrb[44].mxu1 }
 0xb65   :  { %v2308_v1 = vadd.f32 %v2307_v0, %v5382_v58  ;;  %v4325_v2 = vpop.f32.mrb[45].mxu1 }
 0xb66   :  { %v2310_v3 = vpop.f32.mrb[46].mxu1  ;;  %v4613_v2 = vld [vmem:[%s5773_s10 + $0x8] sm:$0xff]  }
 0xb67   :  { %v2311_v6 = vadd.f32 %v2310_v3, %v5384_v60  ;;  %v4326_v7 = vpop.f32.mrb[47].mxu1  ;;  %v2314_v8 = vsel %vm1805_vm13, %v2308_v1, -inf }
 0xb68   :  { %2315 = vmax.xlane.f32.xlu1 %v2314_v8 }
 0xb69   :  { %v2317_v9 = vsel %vm1805_vm13, %v2311_v6, -inf }
 0xb6a   :  { %2318 = vmax.xlane.f32.xlu0 %v2317_v9 }
 0xbf5   :  { %v2316_v10 = vpop.xlane.xlu1 %2315 }
 0xbf6   :  { %v2320_v11 = vsub.f32 %v2308_v1, %v2316_v10 }
 0xbf7   :  { %v2319_v12 = vpop.xlane.xlu0 %2318 }
 0xbf8   :  { %v2322_v13 = vmul.f32 1.442695, %v2320_v11  ;;  %v2321_v14 = vsub.f32 %v2311_v6, %v2319_v12 }
 0xbfa   :  { %4648 = vpow2.f32 %v2322_v13  ;;  %v2324_v15 = vmul.f32 1.442695, %v2321_v14  ;;  %v3945_v13 = vld [vmem:[%s5774_s8] ss:$0 sm:$0xff] }
 0xbfc   :  { %4650 = vpow2.f32 %v2324_v15 }
 0xc04   :  { %v4649_v4 = vpop.eup %4648 }
 0xc05   :  { %v2326_v5 = vsel %vm1805_vm13, %v4649_v4, 0.0 }
 0xc06   :  { %v4651_v16 = vpop.eup %4650  ;;  %2327 = vadd.xlane.f32.xlu0 %v2326_v5  ;;  %v3946_v5 = vld [vmem:[%s5775_s9] ss:$0 sm:$0xff] }
 0xc07   :  { %v2329_v20 = vsel %vm1805_vm13, %v4651_v16, 0.0 }
 0xc08   :  { %2330 = vadd.xlane.f32.xlu1 %v2329_v20 }
 0xc1c   :  { %2337 = vrot.lane.b32.xlu0 %v5370_v28, %s4716_s28 }
 0xc34   :  { %v2254_v21 = vpop.f32.mrb[28].mxu0 }
 0xc35   :  { %v2261_v24 = vadd.f32 %v2254_v21, %v5450_v19  ;;  %v4319_v25 = vpop.f32.mrb[29].mxu0  ;;  %v1647_v19 = vld [vmem:[%s5771_s6 + $0xc] sm:$0xf] }
 0xc36   :  { %v2257_v26 = vpop.f32.mrb[30].mxu0  ;;  %v4614_v25 = vld [vmem:[%s5776_s12] sm:$0xff]  }
 0xc37   :  { %v2262_v27 = vadd.f32 %v2257_v26, %v5452_v22  ;;  %v4320_v29 = vpop.f32.mrb[31].mxu0  ;;  %v2389_v22 = vsel %vm1760_vm5, %v1647_v19, 0  ;;  %v4615_v26 = vld [vmem:[%s5776_s12 + $0x8] sm:$0xff]   ;;  %v3951_v19 = vld [vmem:[%s5778_s13] ss:$0 sm:$0xff] }
 0xc38   :  { %4334 = vmatpush3.bf16.msra.mxu1 %v2389_v22 }
 0xc39   :  { %4347 = vmatprep.subr.bf16.mxu1 %v4706_v23 }
 0xc93   :  { %v2328_v30 = vpop.xlane.xlu0 %2327 }
 0xc94   :  { %4652 = vrcp.f32 %v2328_v30 }
 0xc95   :  { %v2331_v31 = vpop.xlane.xlu1 %2330 }
 0xc96   :  { %4654 = vrcp.f32 %v2331_v31 }
 0xc97   :  { %v2338_v32 = vpop.permute.xlu0 %2337 }
 0xc98   :  { %4328 = vmatpush3.bf16.msra.mxu0 %v2338_v32 }
 0xc99   :  { %4339 = vmatprep.subr.bf16.mxu0 %v4706_v23 }
 0xc9e   :  { %v4653_v33 = vpop.eup %4652 }
 0xc9f   :  { %v2334_v35 = vmul.f32 %v4653_v33, %v4649_v4 }
 0xca0   :  { %v4655_v34 = vpop.eup %4654 }
 0xca1   :  { %v2335_v28 = vmul.f32 %v4655_v34, %v4651_v16 }
 0xca3   :  { %v2336_v36 = vpack.c.bf16 %v2335_v28, %v2334_v35 }
 0xca5   :  { %4330 = vmatmul.mubr.msk.bf16.vlgmr.msra.gmra.mrb[32].mxu0 %vm1805_vm13, %v2336_v36 }
 0xca6   :  { %4343 = vmatprep.mubr.msk.bf16.mxu0 %vm4707_vm3, %v4706_v23 }
 0xd78   :  { %v2377_v37 = vpop.f32.mrb[32].mxu0 }
 0xd79   :  { %v4331_v38 = vpop.f32.mrb[33].mxu0 }
 0xd7a   :  { %v2380_v39 = vpop.f32.mrb[34].mxu0 }
 0xd7b   :  { %v2384_v40 = vpack.c.bf16 %v2380_v39, %v2377_v37  ;;  %v4332_v41 = vpop.f32.mrb[35].mxu0 }
 0xd7d   :  { %4336 = vmatmul.mubr.msk.bf16.vlgmr.msra.gmra.mrb[48].mxu1 %vm1756_vm6, %v2384_v40 }
 0xd7e   :  { %4351 = vmatprep.mubr.msk.bf16.mxu1 %vm4707_vm3, %v4706_v23  ;;  %4348 = vmatpush3.bf16.msra.mxu1 %v4614_v25 }
 0xd7f   :  { %4349 = vmatprep.subr.bf16.mxu1 %v4706_v23 }
 0xd82   :  { %4350 = vmatpush3.bf16.msra.mxu1 %v4615_v26 }
 0xd83   :  { %4363 = vmatprep.subr.bf16.mxu1 %v4706_v23 }
 0xe50   :  { %v2425_v43 = vpop.f32.mrb[48].mxu1 }
 0xe51   :  { %v2432_v44 = vadd.f32 %v2425_v43, %v2261_v24  ;;  %v4337_v45 = vpop.f32.mrb[49].mxu1 }
 0xe52   :  { %v2428_v46 = vpop.f32.mrb[50].mxu1 }
 0xe53   :  { %v2440_v47 = vadd.f32 %v3944_v42, %v2432_v44  ;;  %v2433_v48 = vadd.f32 %v2428_v46, %v2262_v27  ;;  %v4338_v49 = vpop.f32.mrb[51].mxu1  ;;  %v3947_v27 = vld [vmem:[%s5777_s11] ss:$0 sm:$0xff] }
 0xe55   :  { %v2441_v50 = vadd.f32 %v3944_v42, %v2433_v48  ;;  %v2442_v51 = vadd.f32 %v2440_v47, %v5357_v17 }
 0xe57   :  { %v2446_v52 = vsel %vm1668_vm4, %v2442_v51, 0.0  ;;  %v2443_v53 = vadd.f32 %v2441_v50, %v5359_v18  ;;  %v4612_v18 = vld [vmem:[%s5773_s10] sm:$0xff]  }
 0xe58   :  { %2447 = vadd.xlane.f32.xlu1 %v2446_v52  ;;  %4340 = vmatpush3.bf16.msra.mxu0 %v4612_v18 }
 0xe59   :  { %v2449_v54 = vsel %vm1668_vm4, %v2443_v53, 0.0  ;;  %4341 = vmatprep.subr.bf16.mxu0 %v4706_v23 }
 0xe5c   :  { %2450 = vadd.xlane.f32.xlu1 %v2449_v54  ;;  %4342 = vmatpush3.bf16.msra.mxu0 %v4613_v2  ;;  %v3955_v2 = vld [vmem:[%s5779_s14] ss:$0 sm:$0xff] }
 0xe5d   :  { %4355 = vmatprep.subr.bf16.mxu0 %v4706_v23 }
 0xee5   :  { %v2448_v55 = vpop.xlane.xlu1 %2447 }
 0xee6   :  { %v2453_v56 = vmul.f32 0.03125, %v2448_v55 }
 0xee8   :  { %v2455_v57 = vsub.f32 %v2442_v51, %v2453_v56  ;;  %v4616_v56 = vld [vmem:[%s5768_s4 + $0x10] sm:$0xff]  }
 0xee9   :  { %v2451_v59 = vpop.xlane.xlu1 %2450 }
 0xeea   :  { %v2454_v61 = vmul.f32 0.03125, %v2451_v59  ;;  %v2457_v62 = vmul.f32 %v2455_v57, %v2455_v57 }
 0xeec   :  { %v2456_v63 = vsub.f32 %v2443_v53, %v2454_v61  ;;  %v2459_v0 = vsel %vm1668_vm4, %v2457_v62, 0.0 }
 0xeed   :  { %2460 = vadd.xlane.f32.xlu1 %v2459_v0 }
 0xeee   :  { %v2458_v1 = vmul.f32 %v2456_v63, %v2456_v63 }
 0xef0   :  { %v2462_v17 = vsel %vm1668_vm4, %v2458_v1, 0.0 }
 0xef1   :  { %2463 = vadd.xlane.f32.xlu1 %v2462_v17 }
 0xf7a   :  { %v2461_v3 = vpop.xlane.xlu1 %2460 }
 0xf7b   :  { %v2465_v6 = vmul.f32 0.03125, %v2461_v3 }
 0xf7d   :  { %v2467_v7 = vadd.f32 1e-05, %v2465_v6 }
 0xf7e   :  { %v2464_v8 = vpop.xlane.xlu1 %2463 }
 0xf7f   :  { %4656 = vrsqrt.f32 %v2467_v7  ;;  %v2466_v9 = vmul.f32 0.03125, %v2464_v8  ;;  %v3956_v8 = vld [vmem:[%s5780_s15] ss:$0 sm:$0xff] }
 0xf81   :  { %v2468_v10 = vadd.f32 1e-05, %v2466_v9 }
 0xf83   :  { %4658 = vrsqrt.f32 %v2468_v10 }
 0xf89   :  { %v4657_v11 = vpop.eup %4656 }
 0xf8a   :  { %v2471_v12 = vmul.f32 %v4657_v11, %v2455_v57  ;;  %v4617_v57 = vld [vmem:[%s5768_s4 + $0x18] sm:$0xff]  }
 0xf8c   :  { %v2479_v15 = vmul.f32 %v3945_v13, %v2471_v12 }
 0xf8d   :  { %v4659_v14 = vpop.eup %4658 }
 0xf8e   :  { %v2472_v4 = vmul.f32 %v4659_v14, %v2456_v63  ;;  %v2487_v20 = vadd.f32 %v3946_v5, %v2479_v15 }
 0xf90   :  { %v2480_v16 = vmul.f32 %v3945_v13, %v2472_v4  ;;  %v3967_v13 = vld [vmem:[%s5770_s5 + $0x1] ss:$0 sm:$0xff] }
 0xf92   :  { %v2488_v21 = vadd.f32 %v3946_v5, %v2480_v16 }
 0xf94   :  { %v2489_v24 = vpack.c.bf16 %v2488_v21, %v2487_v20 }
 0xf96   :  { %4344 = vmatmul.mubr.msk.bf16.vlgmr.msra.gmra.mrb[36].mxu0 %vm1668_vm4, %v2489_v24 }
 0xf97   :  { %4359 = vmatprep.mubr.msk.bf16.mxu0 %vm4707_vm3, %v4706_v23  ;;  %4356 = vmatpush3.bf16.msra.mxu0 %v4616_v56 }
 0xf98   :  { %4357 = vmatprep.subr.bf16.mxu0 %v4706_v23 }
 0xf9b   :  { %4358 = vmatpush3.bf16.msra.mxu0 %v4617_v57 }
 0xf9c   :  { %4369 = vmatprep.subr.bf16.mxu0 %v4706_v23 }
0x1069   :  { %v2550_v29 = vpop.f32.mrb[36].mxu0 }
0x106a   :  { %v2551_v30 = vadd.f32 %v3947_v27, %v2550_v29  ;;  %v4345_v31 = vpop.f32.mrb[37].mxu0 }
0x106b   :  { %v2553_v32 = vpop.f32.mrb[38].mxu0 }
0x106c   :  { %v2554_v33 = vadd.f32 %v3947_v27, %v2553_v32  ;;  %v4346_v34 = vpop.f32.mrb[39].mxu0  ;;  %v2557_v35 = vmax.f32 %v2551_v30, 0.0 }
0x106e   :  { %v2558_v28 = vmax.f32 %v2554_v33, 0.0 }
0x1070   :  { %v2559_v36 = vpack.c.bf16 %v2558_v28, %v2557_v35 }
0x1072   :  { %4352 = vmatmul.mubr.msk.bf16.vlgmr.msra.gmra.mrb[52].mxu1 %vm1668_vm4, %v2559_v36 }
0x1073   :  { %4365 = vmatprep.mubr.msk.bf16.mxu1 %vm4707_vm3, %v4706_v23 }
0x1145   :  { %v2620_v22 = vpop.f32.mrb[52].mxu1 }
0x1146   :  { %v2621_v37 = vadd.f32 %v3951_v19, %v2620_v22  ;;  %v4353_v38 = vpop.f32.mrb[53].mxu1 }
0x1147   :  { %v2623_v39 = vpop.f32.mrb[54].mxu1 }
0x1148   :  { %v2624_v40 = vadd.f32 %v3951_v19, %v2623_v39  ;;  %v4354_v41 = vpop.f32.mrb[55].mxu1  ;;  %v2627_v42 = vadd.f32 %v2621_v37, %v2487_v20 }
0x114a   :  { %v2631_v43 = vsel %vm1668_vm4, %v2627_v42, 0.0  ;;  %v2628_v44 = vadd.f32 %v2624_v40, %v2488_v21 }
0x114b   :  { %2632 = vadd.xlane.f32.xlu1 %v2631_v43 }
0x114c   :  { %v2634_v45 = vsel %vm1668_vm4, %v2628_v44, 0.0 }
0x114f   :  { %2635 = vadd.xlane.f32.xlu1 %v2634_v45 }
0x11d8   :  { %v2633_v46 = vpop.xlane.xlu1 %2632 }
0x11d9   :  { %v2637_v47 = vmul.f32 0.03125, %v2633_v46 }
0x11db   :  { %v2639_v48 = vsub.f32 %v2627_v42, %v2637_v47 }
0x11dc   :  { %v2636_v49 = vpop.xlane.xlu1 %2635 }
0x11dd   :  { %v2638_v50 = vmul.f32 0.03125, %v2636_v49  ;;  %v2641_v51 = vmul.f32 %v2639_v48, %v2639_v48 }
0x11df   :  { %v2640_v52 = vsub.f32 %v2628_v44, %v2638_v50  ;;  %v2643_v53 = vsel %vm1668_vm4, %v2641_v51, 0.0 }
0x11e0   :  { %2644 = vadd.xlane.f32.xlu0 %v2643_v53 }
0x11e1   :  { %v2642_v54 = vmul.f32 %v2640_v52, %v2640_v52 }
0x11e3   :  { %v2646_v55 = vsel %vm1668_vm4, %v2642_v54, 0.0 }
0x11e4   :  { %2647 = vadd.xlane.f32.xlu1 %v2646_v55 }
0x126d   :  { %v2645_v59 = vpop.xlane.xlu0 %2644 }
0x126e   :  { %v2649_v61 = vmul.f32 0.03125, %v2645_v59 }
0x1270   :  { %v2651_v62 = vadd.f32 1e-05, %v2649_v61 }
0x1271   :  { %v2648_v63 = vpop.xlane.xlu1 %2647 }
0x1272   :  { %4660 = vrsqrt.f32 %v2651_v62  ;;  %v2650_v0 = vmul.f32 0.03125, %v2648_v63 }
0x1274   :  { %v2652_v1 = vadd.f32 1e-05, %v2650_v0 }
0x1276   :  { %4662 = vrsqrt.f32 %v2652_v1 }
0x127c   :  { %v4661_v17 = vpop.eup %4660 }
0x127d   :  { %v2655_v18 = vmul.f32 %v4661_v17, %v2639_v48 }
0x127f   :  { %v2663_v6 = vmul.f32 %v3955_v2, %v2655_v18 }
0x1280   :  { %v4663_v3 = vpop.eup %4662 }
0x1281   :  { %v2656_v7 = vmul.f32 %v4663_v3, %v2640_v52  ;;  %v5565_v10 = vadd.f32 %v3956_v8, %v2663_v6 }
0x1283   :  { %v2664_v9 = vmul.f32 %v3955_v2, %v2656_v7 }
0x1285   :  { %v5567_v11 = vadd.f32 %v3956_v8, %v2664_v9 }
0x1287   :  { %v2687_v12 = vpack.c.bf16 %v5567_v11, %v5565_v10 }
0x1289   :  { %4360 = vmatmul.mubr.msk.bf16.vlgmr.msra.gmra.mrb[40].mxu0 %vm1668_vm4, %v2687_v12 }
0x128a   :  { %4371 = vmatprep.mubr.msk.bf16.mxu0 %vm4707_vm3, %v4706_v23 }
0x135c   :  { %v2743_v14 = vpop.f32.mrb[40].mxu0 }
0x135d   :  { %v2744_v15 = vadd.f32 %v3967_v13, %v2743_v14  ;;  %v4361_v4 = vpop.f32.mrb[41].mxu0 }
0x135e   :  { %v2746_v5 = vpop.f32.mrb[42].mxu0 }
0x135f   :  { %v2747_v16 = vadd.f32 %v3967_v13, %v2746_v5  ;;  %2753 = vrot.lane.b32.xlu1 %v2744_v15, %s4708_s3  ;;  %v4362_v20 = vpop.f32.mrb[43].mxu0 }
0x1361   :  { %v5578_v21 = vpack.c.bf16 %v2747_v16, %v2744_v15 }
0x1363   :  { %2755 = vrot.lane.b32.xlu1 %v2747_v16, %s4708_s3 }
0x1367   :  { %2912 = vrot.lane.b32.xlu1 %v5578_v21, %s4710_s19 }
0x13d1   :  { %v2754_v24 = vpop.permute.xlu1 %2753 }
0x13d2   :  { %2759 = vxpose.xlu0.b32.start [1/2] (short) (narrow) %v2754_v24, 32 }
0x13d5   :  { %v2756_v25 = vpop.permute.xlu1 %2755 }
0x13d6   :  { %2760 = vxpose.xlu0.b32.end [2/2] (short) (narrow) %v2756_v25, 32 }
0x13d9   :  { %v2913_v33 = vpop.permute.xlu1 %2912 }
0x1452   :  { %v2775_v26 = vpop.trf.xlu0 }
0x1456   :  { %v2776_v27 = vpop.trf.xlu0 }
0x1457   :  { %v2791_v29 = vpack.c.bf16 %v2776_v27, %v2775_v26 }
0x1459   :  { %v2797_v30 = vsel %vm1760_vm5, %v2791_v29, 0  ;;  %v2915_v31 = vrot.slane %v2791_v29, 4 }
0x145a   :  { %4364 = vmatpush3.bf16.msra.mxu1 %v2797_v30  ;;  %v2777_v3 = vpop.trf.xlu0  ;;  %v3962_v30 = vld [vmem:[%s5771_s6 + $0x10] sm:$0xf] }
0x145b   :  { %4375 = vmatprep.subr.bf16.mxu1 %v4706_v23  ;;  %v2920_v32 = vsel %vm1760_vm5, %v2915_v31, 0  ;;  %v3085_v31 = vsel %vm1760_vm5, %v3962_v30, 0 }
0x145d   :  { %4366 = vmatmul.mubr.msk.bf16.vlgmr.msra.gmra.mrb[56].mxu1 %vm1756_vm6, %v5578_v21 }
0x145e   :  { %4376 = vmatpush3.bf16.msra.mxu1 %v2920_v32  ;;  %4377 = vmatprep.mubr.msk.bf16.mxu1 %vm4707_vm3, %v4706_v23  ;;  %v2778_v6 = vpop.trf.xlu0  ;;  %v3963_v32 = vld [vmem:[%s5771_s6 + $0x14] sm:$0xf] }
0x145f   :  { %4387 = vmatprep.subr.bf16.mxu1 %v4706_v23 }
0x1465   :  { %4378 = vmatmul.mubr.msk.bf16.vlgmr.msra.gmra.mrb[60].mxu1 %vm1756_vm6, %v2913_v33  ;;  %v3038_v33 = vsel %vm1760_vm5, %v3963_v32, 0 }
0x1466   :  { %4389 = vmatprep.mubr.msk.bf16.mxu1 %vm4707_vm3, %v4706_v23  ;;  %4388 = vmatpush3.bf16.msra.mxu1 %v3038_v33 }
0x1467   :  { %4399 = vmatprep.subr.bf16.mxu1 %v4706_v23 }
0x1530   :  { %v2833_v34 = vpop.f32.mrb[56].mxu1 }
0x1531   :  { %v2834_v35 = vadd.f32 %v2833_v34, %v5382_v58  ;;  %v4367_v28 = vpop.f32.mrb[57].mxu1 }
0x1532   :  { %v2836_v36 = vpop.f32.mrb[58].mxu1 }
0x1533   :  { %v2837_v19 = vadd.f32 %v2836_v36, %v5384_v60  ;;  %v4368_v22 = vpop.f32.mrb[59].mxu1  ;;  %v2840_v37 = vsel %vm1805_vm13, %v2834_v35, -inf }
0x1534   :  { %2841 = vmax.xlane.f32.xlu1 %v2840_v37  ;;  %v5633_v37 = vpack.c.bf16 %v2778_v6, %v2777_v3 }
0x1535   :  { %v2843_v38 = vsel %vm1805_vm13, %v2837_v19, -inf }
0x1538   :  { %2844 = vmax.xlane.f32.xlu1 %v2843_v38  ;;  %v2956_v39 = vpop.f32.mrb[60].mxu1 }
0x1539   :  { %v2957_v40 = vadd.f32 %v2956_v39, %v5382_v58  ;;  %v4379_v41 = vpop.f32.mrb[61].mxu1 }
0x153a   :  { %v2959_v42 = vpop.f32.mrb[62].mxu1 }
0x153b   :  { %v2960_v43 = vadd.f32 %v2959_v42, %v5384_v60  ;;  %v4380_v44 = vpop.f32.mrb[63].mxu1  ;;  %v2963_v45 = vsel %vm1805_vm13, %v2957_v40, -inf  ;;  %v3134_v42 = vsel %vm1760_vm5, %v5633_v37, 0 }
0x153c   :  { %2964 = vmax.xlane.f32.xlu1 %v2963_v45 }
0x153d   :  { %v2966_v46 = vsel %vm1805_vm13, %v2960_v43, -inf }
0x1540   :  { %2967 = vmax.xlane.f32.xlu1 %v2966_v46 }
0x15c1   :  { %v2842_v47 = vpop.xlane.xlu1 %2841 }
0x15c2   :  { %v2846_v48 = vsub.f32 %v2834_v35, %v2842_v47 }
0x15c4   :  { %v2848_v49 = vmul.f32 1.442695, %v2846_v48 }
0x15c5   :  { %v2845_v50 = vpop.xlane.xlu1 %2844 }
0x15c6   :  { %4664 = vpow2.f32 %v2848_v49  ;;  %v2847_v51 = vsub.f32 %v2837_v19, %v2845_v50 }
0x15c8   :  { %v2850_v52 = vmul.f32 1.442695, %v2847_v51 }
0x15c9   :  { %v2965_v57 = vpop.xlane.xlu1 %2964 }
0x15ca   :  { %4666 = vpow2.f32 %v2850_v52  ;;  %v2969_v59 = vsub.f32 %v2957_v40, %v2965_v57 }
0x15cc   :  { %v2971_v62 = vmul.f32 1.442695, %v2969_v59 }
0x15cd   :  { %v2968_v61 = vpop.xlane.xlu1 %2967 }
0x15ce   :  { %v2970_v63 = vsub.f32 %v2960_v43, %v2968_v61  ;;  %4668 = vpow2.f32 %v2971_v62 }
0x15d0   :  { %v4665_v53 = vpop.eup %4664  ;;  %v2973_v0 = vmul.f32 1.442695, %v2970_v63 }
0x15d1   :  { %v2852_v54 = vsel %vm1805_vm13, %v4665_v53, 0.0 }
0x15d2   :  { %2853 = vadd.xlane.f32.xlu1 %v2852_v54  ;;  %4670 = vpow2.f32 %v2973_v0 }
0x15d4   :  { %v4667_v55 = vpop.eup %4666 }
0x15d5   :  { %v2855_v56 = vsel %vm1805_vm13, %v4667_v55, 0.0 }
0x15d6   :  { %2856 = vadd.xlane.f32.xlu0 %v2855_v56 }
0x15d8   :  { %v4669_v1 = vpop.eup %4668 }
0x15d9   :  { %v2975_v17 = vsel %vm1805_vm13, %v4669_v1, 0.0 }
0x15dc   :  { %v4671_v18 = vpop.eup %4670 }
0x15dd   :  { %v2978_v2 = vsel %vm1805_vm13, %v4671_v18, 0.0 }
0x15e3   :  { %2864 = vrot.lane.b32.xlu1 %v5578_v21, %s4711_s0 }
0x1607   :  { %2976 = vadd.xlane.f32.xlu1 %v2975_v17 }
0x160b   :  { %2979 = vadd.xlane.f32.xlu1 %v2978_v2 }
0x161c   :  { %2986 = vrot.lane.b32.xlu1 %v5578_v21, %s4713_s21 }
0x1620   :  { %3128 = vrot.lane.b32.xlu1 %v5578_v21, %s4712_s20 }
0x165f   :  { %v2854_v7 = vpop.xlane.xlu1 %2853 }
0x1660   :  { %4672 = vrcp.f32 %v2854_v7 }
0x1663   :  { %v2857_v8 = vpop.xlane.xlu0 %2856  ;;  %v2865_v9 = vpop.permute.xlu1 %2864 }
0x1664   :  { %4674 = vrcp.f32 %v2857_v8  ;;  %4370 = vmatpush3.bf16.msra.mxu0 %v2865_v9 }
0x1665   :  { %4381 = vmatprep.subr.bf16.mxu0 %v4706_v23 }
0x166a   :  { %v4673_v12 = vpop.eup %4672 }
0x166b   :  { %v2860_v14 = vmul.f32 %v4673_v12, %v4665_v53 }
0x166e   :  { %v4675_v13 = vpop.eup %4674 }
0x166f   :  { %v2861_v15 = vmul.f32 %v4675_v13, %v4667_v55 }
0x1671   :  { %v2862_v4 = vpack.c.bf16 %v2861_v15, %v2860_v14 }
0x1673   :  { %4372 = vmatmul.mubr.msk.bf16.vlgmr.msra.gmra.mrb[44].mxu0 %vm1805_vm13, %v2862_v4 }
0x1674   :  { %4383 = vmatprep.mubr.msk.bf16.mxu0 %vm4707_vm3, %v4706_v23 }
0x1694   :  { %v2977_v5 = vpop.xlane.xlu1 %2976 }
0x1695   :  { %4676 = vrcp.f32 %v2977_v5  ;;  %v3300_v5 = vrot.slane %v5633_v37, 4 }
0x1698   :  { %v2980_v16 = vpop.xlane.xlu1 %2979 }
0x1699   :  { %4678 = vrcp.f32 %v2980_v16 }
0x169c   :  { %v2987_v20 = vpop.permute.xlu1 %2986 }
0x169d   :  { %4382 = vmatpush3.bf16.msra.mxu0 %v2987_v20 }
0x169e   :  { %4393 = vmatprep.subr.bf16.mxu0 %v4706_v23 }
0x169f   :  { %v4677_v24 = vpop.eup %4676 }
0x16a0   :  { %v2983_v26 = vmul.f32 %v4677_v24, %v4669_v1  ;;  %v3129_v43 = vpop.permute.xlu1 %3128 }
0x16a3   :  { %v4679_v25 = vpop.eup %4678 }
0x16a4   :  { %v2984_v27 = vmul.f32 %v4679_v25, %v4671_v18  ;;  %v3305_v25 = vsel %vm1760_vm5, %v3300_v5, 0 }
0x16a6   :  { %v2985_v29 = vpack.c.bf16 %v2984_v27, %v2983_v26  ;;  %v3964_v27 = vld [vmem:[%s5771_s6 + $0x18] sm:$0xf] }
0x16a8   :  { %4384 = vmatmul.mubr.msk.bf16.vlgmr.msra.gmra.mrb[48].mxu0 %vm1805_vm13, %v2985_v29  ;;  %v3252_v29 = vsel %vm1760_vm5, %v3964_v27, 0 }
0x16a9   :  { %4395 = vmatprep.mubr.msk.bf16.mxu0 %vm4707_vm3, %v4706_v23  ;;  %4394 = vmatpush3.bf16.msra.mxu0 %v3085_v31 }
0x16aa   :  { %4405 = vmatprep.subr.bf16.mxu0 %v4706_v23 }
0x1746   :  { %v2904_v34 = vpop.f32.mrb[44].mxu0 }
0x1747   :  { %v4373_v35 = vpop.f32.mrb[45].mxu0 }
0x1748   :  { %v2907_v28 = vpop.f32.mrb[46].mxu0 }
0x1749   :  { %v2911_v36 = vpack.c.bf16 %v2907_v28, %v2904_v34  ;;  %v4374_v19 = vpop.f32.mrb[47].mxu0 }
0x174b   :  { %4396 = vmatmul.mubr.msk.bf16.vlgmr.msra.gmra.mrb[52].mxu0 %vm1756_vm6, %v2911_v36 }
0x174c   :  { %4407 = vmatprep.mubr.msk.bf16.mxu0 %vm4707_vm3, %v4706_v23 }
0x177b   :  { %v3026_v22 = vpop.f32.mrb[48].mxu0 }
0x177c   :  { %v4385_v38 = vpop.f32.mrb[49].mxu0 }
0x177d   :  { %v3029_v39 = vpop.f32.mrb[50].mxu0 }
0x177e   :  { %v3033_v40 = vpack.c.bf16 %v3029_v39, %v3026_v22  ;;  %v4386_v41 = vpop.f32.mrb[51].mxu0 }
0x1780   :  { %4390 = vmatmul.mubr.msk.bf16.vlgmr.msra.gmra.mrb[64].mxu1 %vm1756_vm6, %v3033_v40 }
0x1781   :  { %4400 = vmatpush3.bf16.msra.mxu1 %v3134_v42  ;;  %4401 = vmatprep.mubr.msk.bf16.mxu1 %vm4707_vm3, %v4706_v23 }
0x1782   :  { %4411 = vmatprep.subr.bf16.mxu1 %v4706_v23 }
0x1788   :  { %4402 = vmatmul.mubr.msk.bf16.vlgmr.msra.gmra.mrb[68].mxu1 %vm1756_vm6, %v3129_v43 }
0x1789   :  { %4413 = vmatprep.mubr.msk.bf16.mxu1 %vm4707_vm3, %v4706_v23  ;;  %4412 = vmatpush3.bf16.msra.mxu1 %v3252_v29 }
0x178a   :  { %4423 = vmatprep.subr.bf16.mxu1 %v4706_v23 }
0x181e   :  { %v3121_v44 = vpop.f32.mrb[52].mxu0 }
0x181f   :  { %v4397_v45 = vpop.f32.mrb[53].mxu0 }
0x1820   :  { %v3124_v46 = vpop.f32.mrb[54].mxu0 }
0x1821   :  { %v4398_v47 = vpop.f32.mrb[55].mxu0 }
0x1853   :  { %v3074_v48 = vpop.f32.mrb[64].mxu1 }
0x1854   :  { %v5644_v49 = vadd.f32 %v3121_v44, %v3074_v48  ;;  %v4391_v50 = vpop.f32.mrb[65].mxu1 }
0x1855   :  { %v3077_v51 = vpop.f32.mrb[66].mxu1 }
0x1856   :  { %v5646_v52 = vadd.f32 %v3124_v46, %v3077_v51  ;;  %v4392_v53 = vpop.f32.mrb[67].mxu1 }
0x185b   :  { %v3170_v54 = vpop.f32.mrb[68].mxu1 }
0x185c   :  { %v3171_v55 = vadd.f32 %v3170_v54, %v5382_v58  ;;  %v4403_v56 = vpop.f32.mrb[69].mxu1 }
0x185d   :  { %v3173_v57 = vpop.f32.mrb[70].mxu1 }
0x185e   :  { %v3174_v59 = vadd.f32 %v3173_v57, %v5384_v60  ;;  %v4404_v61 = vpop.f32.mrb[71].mxu1  ;;  %v3177_v62 = vsel %vm1805_vm13, %v3171_v55, -inf }
0x185f   :  { %3178 = vmax.xlane.f32.xlu1 %v3177_v62 }
0x1860   :  { %v3180_v63 = vsel %vm1805_vm13, %v3174_v59, -inf }
0x1861   :  { %3181 = vmax.xlane.f32.xlu0 %v3180_v63 }
0x1870   :  { %3297 = vrot.lane.b32.xlu1 %v5578_v21, %s4714_s24 }
0x18ec   :  { %v3179_v0 = vpop.xlane.xlu1 %3178 }
0x18ed   :  { %v3183_v1 = vsub.f32 %v3171_v55, %v3179_v0 }
0x18ee   :  { %v3182_v17 = vpop.xlane.xlu0 %3181 }
0x18ef   :  { %v3185_v18 = vmul.f32 1.442695, %v3183_v1  ;;  %v3184_v2 = vsub.f32 %v3174_v59, %v3182_v17 }
0x18f0   :  { %v3298_v26 = vpop.permute.xlu1 %3297 }
0x18f1   :  { %4680 = vpow2.f32 %v3185_v18  ;;  %v3187_v3 = vmul.f32 1.442695, %v3184_v2 }
0x18f3   :  { %4682 = vpow2.f32 %v3187_v3 }
0x18fb   :  { %v4681_v6 = vpop.eup %4680 }
0x18fc   :  { %v3189_v7 = vsel %vm1805_vm13, %v4681_v6, 0.0 }
0x18fd   :  { %v4683_v8 = vpop.eup %4682  ;;  %3190 = vadd.xlane.f32.xlu0 %v3189_v7 }
0x18fe   :  { %v3192_v9 = vsel %vm1805_vm13, %v4683_v8, 0.0 }
0x1901   :  { %3193 = vadd.xlane.f32.xlu0 %v3192_v9 }
0x1917   :  { %3200 = vrot.lane.b32.xlu0 %v5578_v21, %s4715_s25 }
0x198a   :  { %v3191_v12 = vpop.xlane.xlu0 %3190 }
0x198b   :  { %4684 = vrcp.f32 %v3191_v12 }
0x198e   :  { %v3194_v13 = vpop.xlane.xlu0 %3193 }
0x198f   :  { %4686 = vrcp.f32 %v3194_v13 }
0x1992   :  { %v3201_v14 = vpop.permute.xlu0 %3200 }
0x1993   :  { %4406 = vmatpush3.bf16.msra.mxu0 %v3201_v14 }
0x1994   :  { %4417 = vmatprep.subr.bf16.mxu0 %v4706_v23 }
0x1995   :  { %v4685_v15 = vpop.eup %4684 }
0x1996   :  { %v3197_v16 = vmul.f32 %v4685_v15, %v4681_v6  ;;  %v3983_v6 = vld [vmem:[%s5772_s7 + $0x1] ss:$0 sm:$0xff] }
0x1999   :  { %v4687_v4 = vpop.eup %4686 }
0x199a   :  { %v3198_v20 = vmul.f32 %v4687_v4, %v4683_v8 }
0x199c   :  { %v3199_v24 = vpack.c.bf16 %v3198_v20, %v3197_v16 }
0x199e   :  { %4408 = vmatmul.mubr.msk.bf16.vlgmr.msra.gmra.mrb[56].mxu0 %vm1805_vm13, %v3199_v24 }
0x199f   :  { %4418 = vmatpush3.bf16.msra.mxu0 %v3305_v25  ;;  %4419 = vmatprep.mubr.msk.bf16.mxu0 %vm4707_vm3, %v4706_v23 }
0x19a0   :  { %4429 = vmatprep.subr.bf16.mxu0 %v4706_v23 }
0x19a6   :  { %4420 = vmatmul.mubr.msk.bf16.vlgmr.msra.gmra.mrb[60].mxu0 %vm1756_vm6, %v3298_v26 }
0x19a7   :  { %4431 = vmatprep.mubr.msk.bf16.mxu0 %vm4707_vm3, %v4706_v23 }
0x1a71   :  { %v3240_v30 = vpop.f32.mrb[56].mxu0 }
0x1a72   :  { %v4409_v31 = vpop.f32.mrb[57].mxu0 }
0x1a73   :  { %v3243_v32 = vpop.f32.mrb[58].mxu0 }
0x1a74   :  { %v3247_v33 = vpack.c.bf16 %v3243_v32, %v3240_v30  ;;  %v4410_v34 = vpop.f32.mrb[59].mxu0 }
0x1a76   :  { %4414 = vmatmul.mubr.msk.bf16.vlgmr.msra.gmra.mrb[72].mxu1 %vm1756_vm6, %v3247_v33 }
0x1a77   :  { %4425 = vmatprep.mubr.msk.bf16.mxu1 %vm4707_vm3, %v4706_v23 }
0x1a79   :  { %v3341_v35 = vpop.f32.mrb[60].mxu0 }
0x1a7a   :  { %v3342_v28 = vadd.f32 %v3341_v35, %v5382_v58  ;;  %v4421_v36 = vpop.f32.mrb[61].mxu0  ;;  %v4619_v35 = vld [vmem:[%s5773_s10 + $0x18] sm:$0xff]  }
0x1a7b   :  { %v3344_v19 = vpop.f32.mrb[62].mxu0 }
0x1a7c   :  { %v3345_v22 = vadd.f32 %v3344_v19, %v5384_v60  ;;  %v4422_v37 = vpop.f32.mrb[63].mxu0  ;;  %v3348_v38 = vsel %vm1805_vm13, %v3342_v28, -inf }
0x1a7d   :  { %3349 = vmax.xlane.f32.xlu0 %v3348_v38 }
0x1a7e   :  { %v3351_v39 = vsel %vm1805_vm13, %v3345_v22, -inf }
0x1a7f   :  { %3352 = vmax.xlane.f32.xlu1 %v3351_v39 }
0x1a90   :  { %3371 = vrot.lane.b32.xlu1 %v5578_v21, %s4716_s28 }
0x1b0a   :  { %v3350_v40 = vpop.xlane.xlu0 %3349 }
0x1b0b   :  { %v3354_v41 = vsub.f32 %v3342_v28, %v3350_v40 }
0x1b0c   :  { %v3353_v42 = vpop.xlane.xlu1 %3352 }
0x1b0d   :  { %v3356_v43 = vmul.f32 1.442695, %v3354_v41  ;;  %v3355_v44 = vsub.f32 %v3345_v22, %v3353_v42  ;;  %v3986_v41 = vld [vmem:[%s5774_s8 + $0x1] ss:$0 sm:$0xff] }
0x1b0f   :  { %4688 = vpow2.f32 %v3356_v43  ;;  %v3358_v58 = vmul.f32 1.442695, %v3355_v44 }
0x1b10   :  { %v3372_v45 = vpop.permute.xlu1 %3371 }
0x1b11   :  { %4690 = vpow2.f32 %v3358_v58  ;;  %4424 = vmatpush3.bf16.msra.mxu1 %v3372_v45  ;;  %v3987_v58 = vld [vmem:[%s5775_s9 + $0x1] ss:$0 sm:$0xff] }
0x1b12   :  { %4435 = vmatprep.subr.bf16.mxu1 %v4706_v23 }
0x1b19   :  { %v4689_v60 = vpop.eup %4688 }
0x1b1a   :  { %v3360_v46 = vsel %vm1805_vm13, %v4689_v60, 0.0 }
0x1b1b   :  { %v4691_v47 = vpop.eup %4690  ;;  %3361 = vadd.xlane.f32.xlu0 %v3360_v46 }
0x1b1c   :  { %v3363_v48 = vsel %vm1805_vm13, %v4691_v47, 0.0 }
0x1b1f   :  { %3364 = vadd.xlane.f32.xlu0 %v3363_v48  ;;  %v4620_v48 = vld [vmem:[%s5776_s12 + $0x10] sm:$0xff]  }
0x1b49   :  { %v3288_v21 = vpop.f32.mrb[72].mxu1 }
0x1b4a   :  { %v3295_v50 = vadd.f32 %v3288_v21, %v5644_v49  ;;  %v4415_v51 = vpop.f32.mrb[73].mxu1  ;;  %v3965_v49 = vld [vmem:[%s5771_s6 + $0x1c] sm:$0xf] }
0x1b4b   :  { %v3291_v53 = vpop.f32.mrb[74].mxu1  ;;  %v4621_v21 = vld [vmem:[%s5776_s12 + $0x18] sm:$0xff]  }
0x1b4c   :  { %v3296_v54 = vadd.f32 %v3291_v53, %v5646_v52  ;;  %v4416_v55 = vpop.f32.mrb[75].mxu1  ;;  %v3423_v52 = vsel %vm1760_vm5, %v3965_v49, 0 }
0x1b4d   :  { %4430 = vmatpush3.bf16.msra.mxu0 %v3423_v52 }
0x1b4e   :  { %4443 = vmatprep.subr.bf16.mxu0 %v4706_v23 }
0x1ba8   :  { %v3362_v56 = vpop.xlane.xlu0 %3361 }
0x1ba9   :  { %4692 = vrcp.f32 %v3362_v56 }
0x1bac   :  { %v3365_v57 = vpop.xlane.xlu0 %3364 }
0x1bad   :  { %4694 = vrcp.f32 %v3365_v57 }
0x1bb3   :  { %v4693_v59 = vpop.eup %4692 }
0x1bb4   :  { %v3368_v62 = vmul.f32 %v4693_v59, %v4689_v60 }
0x1bb7   :  { %v4695_v61 = vpop.eup %4694 }
0x1bb8   :  { %v3369_v63 = vmul.f32 %v4695_v61, %v4691_v47 }
0x1bba   :  { %v3370_v0 = vpack.c.bf16 %v3369_v63, %v3368_v62  ;;  %v4002_v63 = vld [vmem:[%s5778_s13 + $0x1] ss:$0 sm:$0xff] }
0x1bbc   :  { %4426 = vmatmul.mubr.msk.bf16.vlgmr.msra.gmra.mrb[76].mxu1 %vm1805_vm13, %v3370_v0 }
0x1bbd   :  { %4439 = vmatprep.mubr.msk.bf16.mxu1 %vm4707_vm3, %v4706_v23 }
0x1c8f   :  { %v3411_v1 = vpop.f32.mrb[76].mxu1 }
0x1c90   :  { %v4427_v17 = vpop.f32.mrb[77].mxu1 }
0x1c91   :  { %v3414_v18 = vpop.f32.mrb[78].mxu1 }
0x1c92   :  { %v3418_v2 = vpack.c.bf16 %v3414_v18, %v3411_v1  ;;  %v4428_v3 = vpop.f32.mrb[79].mxu1 }
0x1c94   :  { %4432 = vmatmul.mubr.msk.bf16.vlgmr.msra.gmra.mrb[64].mxu0 %vm1756_vm6, %v3418_v2 }
0x1c95   :  { %4447 = vmatprep.mubr.msk.bf16.mxu0 %vm4707_vm3, %v4706_v23  ;;  %4444 = vmatpush3.bf16.msra.mxu0 %v4620_v48 }
0x1c96   :  { %4445 = vmatprep.subr.bf16.mxu0 %v4706_v23 }
0x1c99   :  { %4446 = vmatpush3.bf16.msra.mxu0 %v4621_v21 }
0x1d67   :  { %v3459_v7 = vpop.f32.mrb[64].mxu0 }
0x1d68   :  { %v3466_v8 = vadd.f32 %v3459_v7, %v3295_v50  ;;  %v4433_v9 = vpop.f32.mrb[65].mxu0  ;;  %v3993_v50 = vld [vmem:[%s5777_s11 + $0x1] ss:$0 sm:$0xff] }
0x1d69   :  { %v3462_v12 = vpop.f32.mrb[66].mxu0 }
0x1d6a   :  { %v3474_v13 = vadd.f32 %v3983_v6, %v3466_v8  ;;  %v3467_v14 = vadd.f32 %v3462_v12, %v3296_v54  ;;  %v4434_v15 = vpop.f32.mrb[67].mxu0 }
0x1d6c   :  { %v3475_v4 = vadd.f32 %v3983_v6, %v3467_v14  ;;  %v3476_v5 = vadd.f32 %v3474_v13, %v5565_v10 }
0x1d6e   :  { %v3482_v16 = vsel %vm1668_vm4, %v3476_v5, 0.0  ;;  %v3477_v20 = vadd.f32 %v3475_v4, %v5567_v11  ;;  %v4618_v11 = vld [vmem:[%s5773_s10 + $0x10] sm:$0xff]  }
0x1d6f   :  { %3483 = vadd.xlane.f32.xlu0 %v3482_v16  ;;  %4436 = vmatpush3.bf16.msra.mxu1 %v4618_v11 }
0x1d70   :  { %v3485_v24 = vsel %vm1668_vm4, %v3477_v20, 0.0  ;;  %4437 = vmatprep.subr.bf16.mxu1 %v4706_v23 }
0x1d73   :  { %3486 = vadd.xlane.f32.xlu0 %v3485_v24  ;;  %4438 = vmatpush3.bf16.msra.mxu1 %v4619_v35  ;;  %v4622_v24 = vld [vmem:[%s5781_s16] sm:$0xff]  }
0x1d74   :  { %4451 = vmatprep.subr.bf16.mxu1 %v4706_v23 }
0x1dfc   :  { %v3484_v25 = vpop.xlane.xlu0 %3483 }
0x1dfd   :  { %v3488_v26 = vmul.f32 0.03125, %v3484_v25  ;;  %v4623_v25 = vld [vmem:[%s5781_s16 + $0x8] sm:$0xff]  }
0x1dff   :  { %v3490_v27 = vsub.f32 %v3476_v5, %v3488_v26 }
0x1e00   :  { %v3487_v29 = vpop.xlane.xlu0 %3486 }
0x1e01   :  { %v3489_v30 = vmul.f32 0.03125, %v3487_v29  ;;  %v3492_v31 = vmul.f32 %v3490_v27, %v3490_v27 }
0x1e03   :  { %v3491_v32 = vsub.f32 %v3477_v20, %v3489_v30  ;;  %v3494_v33 = vsel %vm1668_vm4, %v3492_v31, 0.0 }
0x1e04   :  { %3495 = vadd.xlane.f32.xlu0 %v3494_v33 }
0x1e05   :  { %v3493_v34 = vmul.f32 %v3491_v32, %v3491_v32 }
0x1e07   :  { %v3497_v10 = vsel %vm1668_vm4, %v3493_v34, 0.0 }
0x1e08   :  { %3498 = vadd.xlane.f32.xlu0 %v3497_v10  ;;  %v4008_v10 = vld [vmem:[%s5779_s14 + $0x1] ss:$0 sm:$0xff] }
0x1e91   :  { %v3496_v28 = vpop.xlane.xlu0 %3495 }
0x1e92   :  { %v3500_v36 = vmul.f32 0.03125, %v3496_v28 }
0x1e94   :  { %v3502_v19 = vadd.f32 1e-05, %v3500_v36 }
0x1e95   :  { %v3499_v22 = vpop.xlane.xlu0 %3498 }
0x1e96   :  { %4696 = vrsqrt.f32 %v3502_v19  ;;  %v3501_v37 = vmul.f32 0.03125, %v3499_v22 }
0x1e98   :  { %v3503_v38 = vadd.f32 1e-05, %v3501_v37 }
0x1e9a   :  { %4698 = vrsqrt.f32 %v3503_v38  ;;  %v4010_v38 = vld [vmem:[%s5782_s17] ss:$0 sm:$0xff] }
0x1ea0   :  { %v4697_v39 = vpop.eup %4696 }
0x1ea1   :  { %v3506_v40 = vmul.f32 %v4697_v39, %v3490_v27 }
0x1ea3   :  { %v3514_v43 = vmul.f32 %v3986_v41, %v3506_v40 }
0x1ea4   :  { %v4699_v42 = vpop.eup %4698 }
0x1ea5   :  { %v3507_v44 = vmul.f32 %v4699_v42, %v3491_v32  ;;  %v3522_v60 = vadd.f32 %v3987_v58, %v3514_v43 }
0x1ea7   :  { %v3515_v45 = vmul.f32 %v3986_v41, %v3507_v44 }
0x1ea9   :  { %v3523_v46 = vadd.f32 %v3987_v58, %v3515_v45 }
0x1eab   :  { %v3524_v47 = vpack.c.bf16 %v3523_v46, %v3522_v60 }
0x1ead   :  { %4440 = vmatmul.mubr.msk.bf16.vlgmr.msra.gmra.mrb[80].mxu1 %vm1668_vm4, %v3524_v47 }
0x1eae   :  { %4455 = vmatprep.mubr.msk.bf16.mxu1 %vm4707_vm3, %v4706_v23  ;;  %4452 = vmatpush3.bf16.msra.mxu1 %v4622_v24 }
0x1eaf   :  { %4453 = vmatprep.subr.bf16.mxu1 %v4706_v23  ;;  %v4009_v23 = vld [vmem:[%s5780_s15 + $0x1] ss:$0 sm:$0xff] }
0x1eb2   :  { %4454 = vmatpush3.bf16.msra.mxu1 %v4623_v25 }
0x1f80   :  { %v3587_v51 = vpop.f32.mrb[80].mxu1 }
0x1f81   :  { %v3588_v53 = vadd.f32 %v3993_v50, %v3587_v51  ;;  %v4441_v54 = vpop.f32.mrb[81].mxu1 }
0x1f82   :  { %v3590_v55 = vpop.f32.mrb[82].mxu1 }
0x1f83   :  { %v3591_v56 = vadd.f32 %v3993_v50, %v3590_v55  ;;  %v4442_v57 = vpop.f32.mrb[83].mxu1  ;;  %v3594_v59 = vmax.f32 %v3588_v53, 0.0 }
0x1f85   :  { %v3595_v61 = vmax.f32 %v3591_v56, 0.0 }
0x1f87   :  { %v3596_v62 = vpack.c.bf16 %v3595_v61, %v3594_v59 }
0x1f89   :  { %4448 = vmatmul.mubr.msk.bf16.vlgmr.msra.gmra.mrb[68].mxu0 %vm1668_vm4, %v3596_v62 }
0x205c   :  { %v3659_v0 = vpop.f32.mrb[68].mxu0 }
0x205d   :  { %v3660_v49 = vadd.f32 %v4002_v63, %v3659_v0  ;;  %v4449_v52 = vpop.f32.mrb[69].mxu0 }
0x205e   :  { %v3662_v1 = vpop.f32.mrb[70].mxu0 }
0x205f   :  { %v3663_v17 = vadd.f32 %v4002_v63, %v3662_v1  ;;  %v4450_v18 = vpop.f32.mrb[71].mxu0  ;;  %v3666_v2 = vadd.f32 %v3660_v49, %v3522_v60 }
0x2061   :  { %v3672_v3 = vsel %vm1668_vm4, %v3666_v2, 0.0  ;;  %v3667_v6 = vadd.f32 %v3663_v17, %v3523_v46 }
0x2062   :  { %3673 = vadd.xlane.f32.xlu0 %v3672_v3 }
0x2063   :  { %v3675_v7 = vsel %vm1668_vm4, %v3667_v6, 0.0 }
0x2064   :  { %3676 = vadd.xlane.f32.xlu1 %v3675_v7 }
0x20ef   :  { %v3674_v8 = vpop.xlane.xlu0 %3673 }
0x20f0   :  { %v3678_v9 = vmul.f32 0.03125, %v3674_v8 }
0x20f1   :  { %v3677_v12 = vpop.xlane.xlu1 %3676 }
0x20f2   :  { %v3680_v13 = vsub.f32 %v3666_v2, %v3678_v9  ;;  %v3679_v14 = vmul.f32 0.03125, %v3677_v12 }
0x20f4   :  { %v3681_v15 = vsub.f32 %v3667_v6, %v3679_v14  ;;  %v3682_v4 = vmul.f32 %v3680_v13, %v3680_v13 }
0x20f6   :  { %v3684_v5 = vsel %vm1668_vm4, %v3682_v4, 0.0  ;;  %v3683_v16 = vmul.f32 %v3681_v15, %v3681_v15 }
0x20f7   :  { %3685 = vadd.xlane.f32.xlu0 %v3684_v5 }
0x20f8   :  { %v3687_v20 = vsel %vm1668_vm4, %v3683_v16, 0.0 }
0x20fb   :  { %3688 = vadd.xlane.f32.xlu0 %v3687_v20 }
0x2184   :  { %v3686_v26 = vpop.xlane.xlu0 %3685 }
0x2185   :  { %v3690_v27 = vmul.f32 0.03125, %v3686_v26 }
0x2187   :  { %v3692_v29 = vadd.f32 1e-05, %v3690_v27 }
0x2188   :  { %v3689_v30 = vpop.xlane.xlu0 %3688 }
0x2189   :  { %4700 = vrsqrt.f32 %v3692_v29  ;;  %v3691_v31 = vmul.f32 0.03125, %v3689_v30 }
0x218b   :  { %v3693_v32 = vadd.f32 1e-05, %v3691_v31 }
0x218d   :  { %4702 = vrsqrt.f32 %v3693_v32 }
0x2193   :  { %v4701_v33 = vpop.eup %4700 }
0x2194   :  { %v3696_v34 = vmul.f32 %v4701_v33, %v3680_v13 }
0x2196   :  { %v3704_v35 = vmul.f32 %v4008_v10, %v3696_v34 }
0x2197   :  { %v4703_v11 = vpop.eup %4702 }
0x2198   :  { %v3697_v28 = vmul.f32 %v4703_v11, %v3681_v15  ;;  %v3712_v19 = vadd.f32 %v4009_v23, %v3704_v35 }
0x219a   :  { %v3705_v36 = vmul.f32 %v4008_v10, %v3697_v28 }
0x219c   :  { %v3713_v22 = vadd.f32 %v4009_v23, %v3705_v36 }
0x219e   :  { %v3714_v37 = vpack.c.bf16 %v3713_v22, %v3712_v19 }
0x21a0   :  { %4456 = vmatmul.mubr.msk.bf16.vlgmr.msra.gmra.mrb[84].mxu1 %vm1668_vm4, %v3714_v37 }
0x2273   :  { %v3775_v39 = vpop.f32.mrb[84].mxu1 }
0x2274   :  { %v3776_v40 = vadd.f32 %v4010_v38, %v3775_v39  ;;  %v4457_v41 = vpop.f32.mrb[85].mxu1 }
0x2275   :  { %v3778_v42 = vpop.f32.mrb[86].mxu1 }
0x2276   :  { %3782 = vst [vmem:[%s5783_s18] sm:$0xff] %v3776_v40  ;;  %v3779_v43 = vadd.f32 %v4010_v38, %v3778_v42  ;;  %v4458_v44 = vpop.f32.mrb[87].mxu1 }
0x2278   :  { %3783 = vst [vmem:[%s5783_s18 + $0x8] sm:$0xff] %v3779_v43 }

</bundles_post_ra>
